<compile_context>
chip_gen: v7x
topology: tpu7x:2x2x1
jax: 0.10.0
libtpu: 0.0.40
codegen_flags: <defaults>
</compile_context>

<pallas_src>
import functools

import jax
import jax.numpy as jnp
from jax.experimental import pallas as pl
from jax.experimental.pallas import tpu as pltpu


# ------------------------- hardware-aware sizing --------------------------- #
def _vmem_limit_bytes():
    """Generation-aware VMEM limit: ~48 MiB on v7x (64 MiB/TC), ~96 MiB on
    v5e/v6e (128 MiB).  Conservative fallback if the query fails."""
    cap = 64 * 1024 * 1024
    try:
        info = pltpu.get_tpu_info()
        cap = int(getattr(info, "vmem_capacity_bytes", cap) or cap)
    except Exception:
        pass
    return int(min(max(cap - 16 * 1024 * 1024, 24 * 1024 * 1024),
                   96 * 1024 * 1024))


def _choose_tile_rows(H, Wpad, cin, cmid, NP, vmem_limit):
    """Image rows per grid step: target ~2048 flat matmul rows per step,
    capped by the VMEM budget and by >= 4 grid steps (v7x has 2 TCs)."""
    # resident weights (worst case: double-buffered)
    wbytes = 2 * ((3 * 3 * cin * cmid + cmid * NP) * 2 + (cmid + NP) * 4)
    # per flat-row bytes: double-buffered x/out blocks plus live temporaries
    row_bytes = 12 * cin + 10 * cmid + 16 * NP + 256
    budget = max(vmem_limit - wbytes - (4 << 20), 1 << 20)
    rows = max(min(2048, budget // row_bytes), Wpad)
    TH = max(1, min(H, rows // Wpad))
    TH = min(TH, max(1, pl.cdiv(H, 4)))        # keep the grid >= 4 steps
    return TH


# --------------------- pltpu.roll direction / availability ----------------- #
_ROLL_CACHE = {}


def _detect_roll(rows, cols):
    """Return ("pltpu", sign) such that pltpu.roll(v, (sign*k) % rows, axis=0)
    satisfies result[p] == v[(p + k) % rows], or ("jnp", 0) as a fallback."""
    key = (int(rows), int(cols))
    if key not in _ROLL_CACHE:
        try:
            def probe(x_ref, o_ref):
                o_ref[...] = pltpu.roll(x_ref[...], shift=1, axis=0)

            x = jnp.broadcast_to(
                jnp.arange(rows, dtype=jnp.float32)[:, None], (rows, cols))
            r = pl.pallas_call(
                probe,
                out_shape=jax.ShapeDtypeStruct((rows, cols), jnp.float32))(x)
            v = float(r[0, 0])
            if v == float(rows - 1):
                _ROLL_CACHE[key] = ("pltpu", -1)     # np.roll convention
            elif v == 1.0:
                _ROLL_CACHE[key] = ("pltpu", 1)
            else:
                _ROLL_CACHE[key] = ("jnp", 0)
        except Exception:
            _ROLL_CACHE[key] = ("jnp", 0)
    return _ROLL_CACHE[key]


# ----------------------------- Pallas kernel ------------------------------ #
def _rpn_head_kernel(x_ref, w0_ref, w1_ref, w2_ref, bconv_ref, wf_ref, bf_ref,
                     out_ref, *, A, NP, roll_mode, roll_sign):
    """One row tile of the RPN head on the flattened, ky-packed feature slab."""
    TF = x_ref.shape[0]

    def shift_up(v, k):
        # result[p] = v[p + k]; the k wrapped tail rows land on right-pad
        # columns of the tile's last image row, which the wrapper discards.
        if k == 0:
            return v
        if roll_mode == "pltpu":
            return pltpu.roll(v, shift=(roll_sign * k) % TF, axis=0)   # XLU
        return jnp.roll(v, -k, axis=0)                                 # fallback

    x = x_ref[...]                                        # (TF, 3*Cin) bf16
    # 3x3 conv as 3 K-packed MXU matmuls (one per kx tap), f32 accumulation.
    acc = jnp.dot(x, w0_ref[...], preferred_element_type=jnp.float32)
    acc = acc + shift_up(
        jnp.dot(x, w1_ref[...], preferred_element_type=jnp.float32), 1)
    acc = acc + shift_up(
        jnp.dot(x, w2_ref[...], preferred_element_type=jnp.float32), 2)
    h = jnp.maximum(acc + bconv_ref[...], 0.0).astype(jnp.bfloat16)

    # Both 1x1 convs fused into one lane-dense (TF, NP) matmul + bias.
    y = jnp.dot(h, wf_ref[...], preferred_element_type=jnp.float32) + bf_ref[...]

    # fg prob = softmax([bg, fg])[1] = sigmoid(fg - bg); the fg-bg logit is the
    # [6A, 7A) column band of the fused matmul.  The lane mask is built at
    # (1, NP) and broadcast; the exp argument is clamped so loc / padding
    # lanes can never overflow to inf (approx recip of inf is avoided).
    col = jax.lax.broadcasted_iota(jnp.int32, (1, NP), 1)
    is_fg = jnp.logical_and(col >= 6 * A, col < 7 * A)
    prob = pl.reciprocal(1.0 + jnp.exp(-jnp.maximum(y, -30.0)), approx=True)
    out_ref[...] = jnp.where(is_fg, prob, y)


def _build_head_call(Hp, Wpad, TH, cin, cmid, NP, A, roll_mode, roll_sign,
                     single_buffer_weights, vmem_limit):
    TF = TH * Wpad
    kernel = functools.partial(_rpn_head_kernel, A=A, NP=NP,
                               roll_mode=roll_mode, roll_sign=roll_sign)
    # Grid-invariant operands: request single buffering to free VMEM for TH.
    wkw = dict(pipeline_mode=pl.Buffered(1)) if single_buffer_weights else {}
    return pl.pallas_call(
        kernel,
        out_shape=jax.ShapeDtypeStruct((Hp * Wpad, NP), jnp.float32),
        grid=(Hp // TH,),
        in_specs=[
            pl.BlockSpec((TF, 3 * cin), lambda i: (i, 0)),            # x slab
            pl.BlockSpec((3 * cin, cmid), lambda i: (0, 0), **wkw),   # kx = 0
            pl.BlockSpec((3 * cin, cmid), lambda i: (0, 0), **wkw),   # kx = 1
            pl.BlockSpec((3 * cin, cmid), lambda i: (0, 0), **wkw),   # kx = 2
            pl.BlockSpec((1, cmid), lambda i: (0, 0), **wkw),         # b_conv
            pl.BlockSpec((cmid, NP), lambda i: (0, 0), **wkw),        # fused W
            pl.BlockSpec((1, NP), lambda i: (0, 0), **wkw),           # fused b
        ],
        out_specs=pl.BlockSpec((TF, NP), lambda i: (i, 0)),
        compiler_params=pltpu.CompilerParams(
            dimension_semantics=("parallel",),      # megacore split on v7x
            vmem_limit_bytes=int(vmem_limit),
        ),
    )


# ------------------------------ JAX wrapper -------------------------------- #
def rpn_forward(feature_map, params, n_anchor, tile_h=None):
    """feature_map: (1, Cin, H, W) float32 (PyTorch NCHW convention).

    Returns (loc (1,HWA,4), score (1,HWA,2), fg_score (1,HWA)) like RPN.forward.
    """
    n, cin, H, W = feature_map.shape
    assert n == 1, "RPN.forward hard-codes n = 1"
    A = n_anchor
    cmid = params["w_conv"].shape[0]

    NP = max(128, pl.cdiv(7 * A, 128) * 128)   # lane-dense fused output width
    Wpad = pl.cdiv(W + 2, 8) * 8               # >= W + 2 and sublane aligned

    vmem_limit = _vmem_limit_bytes()
    if tile_h is None:
        TH = _choose_tile_rows(H, Wpad, cin, cmid, NP, vmem_limit)
    else:
        TH = max(1, min(int(tile_h), H))
    Hp = pl.cdiv(H, TH) * TH

    # --- channels-last bf16 features, ky packed into channels, row-major flat:
    #   x_flat[r*Wpad + c', ky*Cin:(ky+1)*Cin] = x[r+ky-1, c'-1, :] (0 outside)
    # Same ~3x feature bytes as 3 shifted copies, but the 3x3 conv becomes
    # 3 K=3*Cin matmuls and no halo / overlap logic is needed between tiles.
    x = jnp.transpose(feature_map[0].astype(jnp.bfloat16), (1, 2, 0))  # (H,W,C)
    xw = jnp.pad(x, ((0, 0), (1, Wpad - 1 - W), (0, 0)))               # width pad
    xhw = jnp.pad(xw, ((1, 1 + Hp - H), (0, 0), (0, 0)))               # height pad
    x_pack = jnp.concatenate([xhw[0:Hp], xhw[1:Hp + 1], xhw[2:Hp + 2]], axis=-1)
    x_flat = x_pack.reshape(Hp * Wpad, 3 * cin)

    # --- conv weights (Cmid, Cin, 3, 3) -> per-kx (3*Cin, Cmid), ky-major rows.
    w9 = jnp.transpose(params["w_conv"], (2, 3, 1, 0))        # (ky,kx,Cin,Cmid)
    wk = jnp.transpose(w9, (1, 0, 2, 3)).reshape(3, 3 * cin, cmid)
    wk = wk.astype(jnp.bfloat16)
    bconv = params["b_conv"].reshape(1, cmid).astype(jnp.float32)

    # --- fused 1x1 weights padded to NP lanes: [loc | bg | fg | fg-bg | 0].
    # Score channels are interleaved (a*2+k) in PyTorch; split them here.
    wl = jnp.transpose(params["w_loc"][:, :, 0, 0], (1, 0))            # (Cmid,4A)
    wbg = jnp.transpose(params["w_score"][0::2, :, 0, 0], (1, 0))      # (Cmid,A)
    wfg = jnp.transpose(params["w_score"][1::2, :, 0, 0], (1, 0))      # (Cmid,A)
    wf = jnp.concatenate(
        [wl, wbg, wfg, wfg - wbg, jnp.zeros((cmid, NP - 7 * A), jnp.float32)],
        axis=1).astype(jnp.bfloat16)
    bl = params["b_loc"]
    bbg = params["b_score"][0::2]
    bfg = params["b_score"][1::2]
    bf = jnp.concatenate(
        [bl, bbg, bfg, bfg - bbg, jnp.zeros((NP - 7 * A,), jnp.float32)]
    ).reshape(1, NP).astype(jnp.float32)

    roll_mode, roll_sign = _detect_roll(TH * Wpad, cmid)

    args = (x_flat, wk[0], wk[1], wk[2], bconv, wf, bf)
    attempts = [(roll_mode, roll_sign, True), (roll_mode, roll_sign, False)]
    if roll_mode != "jnp":
        attempts += [("jnp", 0, True), ("jnp", 0, False)]
    slab, err = None, None
    for rm, rs, sbw in attempts:
        try:
            slab = _build_head_call(Hp, Wpad, TH, cin, cmid, NP, A,
                                    rm, rs, sbw, vmem_limit)(*args)
            break
        except Exception as e:   # fall back if Buffered(1)/pltpu.roll rejected
            err = e
    if slab is None:
        raise err

    # --- drop row/col padding and reassemble the exact PyTorch layouts.
    slab = slab.reshape(Hp, Wpad, NP)[:H, :W, :].reshape(H * W, NP)
    loc = slab[:, :4 * A].reshape(1, H * W * A, 4)
    bg = slab[:, 4 * A:5 * A]
    fg_logit = slab[:, 5 * A:6 * A]
    score = jnp.stack([bg, fg_logit], axis=-1).reshape(1, H * W * A, 2)
    fg = slab[:, 6 * A:7 * A].reshape(1, H * W * A)
    return loc, score, fg


# ---------------------------- pure-JAX reference --------------------------- #
def rpn_forward_ref(x, params, A):
    dn = ('NCHW', 'OIHW', 'NCHW')
    h = jax.lax.conv_general_dilated(x, params["w_conv"], (1, 1), 'SAME',
                                     dimension_numbers=dn)
    h = jnp.maximum(h + params["b_conv"][None, :, None, None], 0.0)
    loc = jax.lax.conv_general_dilated(h, params["w_loc"], (1, 1), 'SAME',
                                       dimension_numbers=dn)
    loc = loc + params["b_loc"][None, :, None, None]
    score = jax.lax.conv_general_dilated(h, params["w_score"], (1, 1), 'SAME',
                                         dimension_numbers=dn)
    score = score + params["b_score"][None, :, None, None]
    n, _, H, W = loc.shape
    loc = jnp.transpose(loc, (0, 2, 3, 1)).reshape(n, -1, 4)
    score = jnp.transpose(score, (0, 2, 3, 1))
    soft = jax.nn.softmax(score.reshape(n, H, W, A, 2), axis=4)
    fg = soft[..., 1].reshape(n, -1)
    score = score.reshape(n, -1, 2)
    return loc, score, fg


if __name__ == "__main__":
    # Small deterministic configuration consistent with the module.
    CIN, CMID, H, W = 16, 32, 16, 16
    scales = [8, 16, 32]
    ratios = [0.5, 1.0, 2.0]
    A = len(scales) * len(ratios)        # n_anchor = 9

    key = jax.random.PRNGKey(0)
    kx_, kc, kl, ks = jax.random.split(key, 4)

    # normal_init(m, 0, 0.01): weights ~ N(0, 0.01), biases zeroed.
    params = {
        "w_conv": 0.01 * jax.random.normal(kc, (CMID, CIN, 3, 3), jnp.float32),
        "b_conv": jnp.zeros((CMID,), jnp.float32),
        "w_loc": 0.01 * jax.random.normal(kl, (4 * A, CMID, 1, 1), jnp.float32),
        "b_loc": jnp.zeros((4 * A,), jnp.float32),
        "w_score": 0.01 * jax.random.normal(ks, (2 * A, CMID, 1, 1), jnp.float32),
        "b_score": jnp.zeros((2 * A,), jnp.float32),
    }

    feature_map = jax.random.normal(kx_, (1, CIN, H, W), jnp.float32)  # NCHW

    # Auto tile sizing: H=16 -> TH=4 -> 4 grid steps, exercising pipelining,
    # the flat-row roll handling and the padded-column junk discard.
    loc, score, fg = rpn_forward(feature_map, params, A)
    jax.block_until_ready((loc, score, fg))

    loc_r, score_r, fg_r = rpn_forward_ref(feature_map, params, A)
    assert loc.shape == (1, H * W * A, 4)
    assert score.shape == (1, H * W * A, 2)
    assert fg.shape == (1, H * W * A)
    assert jnp.allclose(loc, loc_r, atol=2e-3, rtol=2e-3)
    assert jnp.allclose(score, score_r, atol=2e-3, rtol=2e-3)
    assert jnp.allclose(fg, fg_r, atol=2e-3, rtol=2e-3)

    print("KERNEL_OK")
</pallas_src>

<mosaic_0001>
module attributes {stable_mosaic.version = 11 : i64} {
  func.func @probe(%arg0: memref<96x32xf32, #tpu.memory_space<vmem>>, %arg1: memref<96x32xf32, #tpu.memory_space<vmem>>) attributes {dimension_semantics = [], scalar_prefetch = 0 : i64, scratch_operands = 0 : i64, tpu.core_type = #tpu.core_type<tc>} {
    %c0 = arith.constant 0 : index
    %c0_0 = arith.constant 0 : index
    %0 = vector.load %arg0[%c0, %c0_0] : memref<96x32xf32, #tpu.memory_space<vmem>>, vector<96x32xf32>
    %c1_i32 = arith.constant 1 : i32
    %1 = tpu.dynamic_rotate %0 by %c1_i32 dim 0 : vector<96x32xf32>, i32 -> vector<96x32xf32>
    %c0_1 = arith.constant 0 : index
    %c0_2 = arith.constant 0 : index
    %2 = vector.load %arg1[%c0_1, %c0_2] : memref<96x32xf32, #tpu.memory_space<vmem>>, vector<96x32xf32>
    tpu.vector_store %arg1[%c0_1, %c0_2], %1 {strides = array<i32>} : memref<96x32xf32, #tpu.memory_space<vmem>>, vector<96x32xf32>,
    return
  }
}

module attributes {stable_mosaic.version = 11 : i64} {
  func.func @_rpn_head_kernel(%arg0: i32, %arg1: memref<96x48xbf16, #tpu.memory_space<vmem>>, %arg2: memref<48x32xbf16, #tpu.memory_space<vmem>>, %arg3: memref<48x32xbf16, #tpu.memory_space<vmem>>, %arg4: memref<48x32xbf16, #tpu.memory_space<vmem>>, %arg5: memref<1x32xf32, #tpu.memory_space<vmem>>, %arg6: memref<32x128xbf16, #tpu.memory_space<vmem>>, %arg7: memref<1x128xf32, #tpu.memory_space<vmem>>, %arg8: memref<96x128xf32, #tpu.memory_space<vmem>>) attributes {dimension_semantics = [#tpu.dimension_semantics<parallel>], iteration_bounds = array<i64: 4>, scalar_prefetch = 0 : i64, scratch_operands = 0 : i64, tpu.core_type = #tpu.core_type<tc>, window_params = [{transform_indices = @transform_0, window_bounds = array<i64: 96, 48>}, {pipeline_mode = #tpu.pipeline_mode<synchronous>, transform_indices = @transform_1, window_bounds = array<i64: 48, 32>}, {pipeline_mode = #tpu.pipeline_mode<synchronous>, transform_indices = @transform_2, window_bounds = array<i64: 48, 32>}, {pipeline_mode = #tpu.pipeline_mode<synchronous>, transform_indices = @transform_3, window_bounds = array<i64: 48, 32>}, {pipeline_mode = #tpu.pipeline_mode<synchronous>, transform_indices = @transform_4, window_bounds = array<i64: 1, 32>}, {pipeline_mode = #tpu.pipeline_mode<synchronous>, transform_indices = @transform_5, window_bounds = array<i64: 32, 128>}, {pipeline_mode = #tpu.pipeline_mode<synchronous>, transform_indices = @transform_6, window_bounds = array<i64: 1, 128>}, {transform_indices = @transform_7, window_bounds = array<i64: 96, 128>}]} {
    %c0 = arith.constant 0 : index
    %c0_0 = arith.constant 0 : index
    %0 = vector.load %arg1[%c0, %c0_0] : memref<96x48xbf16, #tpu.memory_space<vmem>>, vector<96x48xbf16>
    %c0_1 = arith.constant 0 : index
    %c0_2 = arith.constant 0 : index
    %1 = vector.load %arg2[%c0_1, %c0_2] : memref<48x32xbf16, #tpu.memory_space<vmem>>, vector<48x32xbf16>
    %cst = arith.constant dense<0.000000e+00> : vector<96x32xf32>
    %2 = tpu.matmul %0, %1, %cst {dimension_numbers = #tpu.dot_dimension_numbers<[1], [0], [0], [1], [0, 0, 1, 1], [], []>} : vector<96x48xbf16>, vector<48x32xbf16>, vector<96x32xf32> -> vector<96x32xf32>
    %c0_3 = arith.constant 0 : index
    %c0_4 = arith.constant 0 : index
    %3 = vector.load %arg3[%c0_3, %c0_4] : memref<48x32xbf16, #tpu.memory_space<vmem>>, vector<48x32xbf16>
    %cst_5 = arith.constant dense<0.000000e+00> : vector<96x32xf32>
    %4 = tpu.matmul %0, %3, %cst_5 {dimension_numbers = #tpu.dot_dimension_numbers<[1], [0], [0], [1], [0, 0, 1, 1], [], []>} : vector<96x48xbf16>, vector<48x32xbf16>, vector<96x32xf32> -> vector<96x32xf32>
    %5 = vector.extract_strided_slice %4 {offsets = [1, 0], sizes = [95, 32], strides = [1, 1]} : vector<96x32xf32> to vector<95x32xf32>
    %6 = vector.extract_strided_slice %4 {offsets = [0, 0], sizes = [1, 32], strides = [1, 1]} : vector<96x32xf32> to vector<1x32xf32>
    %7 = tpu.concatenate %5, %6 in 0 : vector<95x32xf32>, vector<1x32xf32> -> vector<96x32xf32>
    %8 = arith.addf %2, %7 : vector<96x32xf32>
    %c0_6 = arith.constant 0 : index
    %c0_7 = arith.constant 0 : index
    %9 = vector.load %arg4[%c0_6, %c0_7] : memref<48x32xbf16, #tpu.memory_space<vmem>>, vector<48x32xbf16>
    %cst_8 = arith.constant dense<0.000000e+00> : vector<96x32xf32>
    %10 = tpu.matmul %0, %9, %cst_8 {dimension_numbers = #tpu.dot_dimension_numbers<[1], [0], [0], [1], [0, 0, 1, 1], [], []>} : vector<96x48xbf16>, vector<48x32xbf16>, vector<96x32xf32> -> vector<96x32xf32>
    %11 = vector.extract_strided_slice %10 {offsets = [2, 0], sizes = [94, 32], strides = [1, 1]} : vector<96x32xf32> to vector<94x32xf32>
    %12 = vector.extract_strided_slice %10 {offsets = [0, 0], sizes = [2, 32], strides = [1, 1]} : vector<96x32xf32> to vector<2x32xf32>
    %13 = tpu.concatenate %11, %12 in 0 : vector<94x32xf32>, vector<2x32xf32> -> vector<96x32xf32>
    %14 = arith.addf %8, %13 : vector<96x32xf32>
    %c0_9 = arith.constant 0 : index
    %c0_10 = arith.constant 0 : index
    %15 = vector.load %arg5[%c0_9, %c0_10] : memref<1x32xf32, #tpu.memory_space<vmem>>, vector<1x32xf32>
    %16 = vector.broadcast %15 : vector<1x32xf32> to vector<96x32xf32>
    %17 = arith.addf %14, %16 : vector<96x32xf32>
    %cst_11 = arith.constant 0.000000e+00 : f32
    %18 = vector.broadcast %cst_11 : f32 to vector<96x32xf32>
    %19 = arith.maximumf %17, %18 : vector<96x32xf32>
    %20 = arith.truncf %19 : vector<96x32xf32> to vector<96x32xbf16>
    %c0_12 = arith.constant 0 : index
    %c0_13 = arith.constant 0 : index
    %21 = vector.load %arg6[%c0_12, %c0_13] : memref<32x128xbf16, #tpu.memory_space<vmem>>, vector<32x128xbf16>
    %cst_14 = arith.constant dense<0.000000e+00> : vector<96x128xf32>
    %22 = tpu.matmul %20, %21, %cst_14 {dimension_numbers = #tpu.dot_dimension_numbers<[1], [0], [0], [1], [0, 0, 1, 1], [], []>} : vector<96x32xbf16>, vector<32x128xbf16>, vector<96x128xf32> -> vector<96x128xf32>
    %c0_15 = arith.constant 0 : index
    %c0_16 = arith.constant 0 : index
    %23 = vector.load %arg7[%c0_15, %c0_16] : memref<1x128xf32, #tpu.memory_space<vmem>>, vector<1x128xf32>
    %24 = vector.broadcast %23 : vector<1x128xf32> to vector<96x128xf32>
    %25 = arith.addf %22, %24 : vector<96x128xf32>
    %26 = tpu.iota {dimensions = array<i32: 1>} : vector<1x128xi32>
    %c54_i32 = arith.constant 54 : i32
    %27 = vector.broadcast %c54_i32 : i32 to vector<1x128xi32>
    %28 = arith.cmpi sge, %26, %27 : vector<1x128xi32>
    %c63_i32 = arith.constant 63 : i32
    %29 = vector.broadcast %c63_i32 : i32 to vector<1x128xi32>
    %30 = arith.cmpi slt, %26, %29 : vector<1x128xi32>
    %31 = arith.andi %28, %30 : vector<1x128xi1>
    %cst_17 = arith.constant -3.000000e+01 : f32
    %32 = vector.broadcast %cst_17 : f32 to vector<96x128xf32>
    %33 = arith.maximumf %25, %32 : vector<96x128xf32>
    %cst_18 = arith.constant 0.000000e+00 : f32
    %34 = vector.broadcast %cst_18 : f32 to vector<96x128xf32>
    %35 = arith.subf %34, %33 : vector<96x128xf32>
    %36 = math.exp %35 : vector<96x128xf32>
    %cst_19 = arith.constant 1.000000e+00 : f32
    %37 = vector.broadcast %cst_19 : f32 to vector<96x128xf32>
    %38 = arith.addf %37, %36 : vector<96x128xf32>
    %39 = tpu.reciprocal %38 {approx = true} : vector<96x128xf32> -> vector<96x128xf32>
    %40 = vector.shape_cast %31 : vector<1x128xi1> to vector<1x128xi1>
    %41 = vector.broadcast %40 : vector<1x128xi1> to vector<96x128xi1>
    %42 = arith.select %41, %39, %25 : vector<96x128xi1>, vector<96x128xf32>
    %c0_20 = arith.constant 0 : index
    %c0_21 = arith.constant 0 : index
    %43 = vector.load %arg8[%c0_20, %c0_21] : memref<96x128xf32, #tpu.memory_space<vmem>>, vector<96x128xf32>
    tpu.vector_store %arg8[%c0_20, %c0_21], %42 {strides = array<i32>} : memref<96x128xf32, #tpu.memory_space<vmem>>, vector<96x128xf32>,
    return
  }
  func.func @transform_0(%arg0: i32) -> (i32, i32) {
    %c0_i32 = arith.constant 0 : i32
    %c0_i32_0 = arith.constant 0 : i32
    return %arg0, %c0_i32 : i32, i32
  }
  func.func @transform_1(%arg0: i32) -> (i32, i32) {
    %c0_i32 = arith.constant 0 : i32
    %c0_i32_0 = arith.constant 0 : i32
    %c0_i32_1 = arith.constant 0 : i32
    return %c0_i32, %c0_i32_0 : i32, i32
  }
  func.func @transform_2(%arg0: i32) -> (i32, i32) {
    %c0_i32 = arith.constant 0 : i32
    %c0_i32_0 = arith.constant 0 : i32
    %c0_i32_1 = arith.constant 0 : i32
    return %c0_i32, %c0_i32_0 : i32, i32
  }
  func.func @transform_3(%arg0: i32) -> (i32, i32) {
    %c0_i32 = arith.constant 0 : i32
    %c0_i32_0 = arith.constant 0 : i32
    %c0_i32_1 = arith.constant 0 : i32
    return %c0_i32, %c0_i32_0 : i32, i32
  }
  func.func @transform_4(%arg0: i32) -> (i32, i32) {
    %c0_i32 = arith.constant 0 : i32
    %c0_i32_0 = arith.constant 0 : i32
    %c0_i32_1 = arith.constant 0 : i32
    return %c0_i32, %c0_i32_0 : i32, i32
  }
  func.func @transform_5(%arg0: i32) -> (i32, i32) {
    %c0_i32 = arith.constant 0 : i32
    %c0_i32_0 = arith.constant 0 : i32
    %c0_i32_1 = arith.constant 0 : i32
    return %c0_i32, %c0_i32_0 : i32, i32
  }
  func.func @transform_6(%arg0: i32) -> (i32, i32) {
    %c0_i32 = arith.constant 0 : i32
    %c0_i32_0 = arith.constant 0 : i32
    %c0_i32_1 = arith.constant 0 : i32
    return %c0_i32, %c0_i32_0 : i32, i32
  }
  func.func @transform_7(%arg0: i32) -> (i32, i32) {
    %c0_i32 = arith.constant 0 : i32
    %c0_i32_0 = arith.constant 0 : i32
    return %arg0, %c0_i32 : i32, i32
  }
}

module attributes {stable_mosaic.version = 11 : i64} {
  func.func @_rpn_head_kernel(%arg0: i32, %arg1: memref<96x48xbf16, #tpu.memory_space<vmem>>, %arg2: memref<48x32xbf16, #tpu.memory_space<vmem>>, %arg3: memref<48x32xbf16, #tpu.memory_space<vmem>>, %arg4: memref<48x32xbf16, #tpu.memory_space<vmem>>, %arg5: memref<1x32xf32, #tpu.memory_space<vmem>>, %arg6: memref<32x128xbf16, #tpu.memory_space<vmem>>, %arg7: memref<1x128xf32, #tpu.memory_space<vmem>>, %arg8: memref<96x128xf32, #tpu.memory_space<vmem>>) attributes {dimension_semantics = [#tpu.dimension_semantics<parallel>], iteration_bounds = array<i64: 4>, scalar_prefetch = 0 : i64, scratch_operands = 0 : i64, tpu.core_type = #tpu.core_type<tc>, window_params = [{transform_indices = @transform_0, window_bounds = array<i64: 96, 48>}, {pipeline_mode = #tpu.pipeline_mode<synchronous>, transform_indices = @transform_1, window_bounds = array<i64: 48, 32>}, {pipeline_mode = #tpu.pipeline_mode<synchronous>, transform_indices = @transform_2, window_bounds = array<i64: 48, 32>}, {pipeline_mode = #tpu.pipeline_mode<synchronous>, transform_indices = @transform_3, window_bounds = array<i64: 48, 32>}, {pipeline_mode = #tpu.pipeline_mode<synchronous>, transform_indices = @transform_4, window_bounds = array<i64: 1, 32>}, {pipeline_mode = #tpu.pipeline_mode<synchronous>, transform_indices = @transform_5, window_bounds = array<i64: 32, 128>}, {pipeline_mode = #tpu.pipeline_mode<synchronous>, transform_indices = @transform_6, window_bounds = array<i64: 1, 128>}, {transform_indices = @transform_7, window_bounds = array<i64: 96, 128>}]} {
    %c0 = arith.constant 0 : index
    %c0_0 = arith.constant 0 : index
    %0 = vector.load %arg1[%c0, %c0_0] : memref<96x48xbf16, #tpu.memory_space<vmem>>, vector<96x48xbf16>
    %c0_1 = arith.constant 0 : index
    %c0_2 = arith.constant 0 : index
    %1 = vector.load %arg2[%c0_1, %c0_2] : memref<48x32xbf16, #tpu.memory_space<vmem>>, vector<48x32xbf16>
    %cst = arith.constant dense<0.000000e+00> : vector<96x32xf32>
    %2 = tpu.matmul %0, %1, %cst {dimension_numbers = #tpu.dot_dimension_numbers<[1], [0], [0], [1], [0, 0, 1, 1], [], []>} : vector<96x48xbf16>, vector<48x32xbf16>, vector<96x32xf32> -> vector<96x32xf32>
    %c0_3 = arith.constant 0 : index
    %c0_4 = arith.constant 0 : index
    %3 = vector.load %arg3[%c0_3, %c0_4] : memref<48x32xbf16, #tpu.memory_space<vmem>>, vector<48x32xbf16>
    %cst_5 = arith.constant dense<0.000000e+00> : vector<96x32xf32>
    %4 = tpu.matmul %0, %3, %cst_5 {dimension_numbers = #tpu.dot_dimension_numbers<[1], [0], [0], [1], [0, 0, 1, 1], [], []>} : vector<96x48xbf16>, vector<48x32xbf16>, vector<96x32xf32> -> vector<96x32xf32>
    %5 = vector.extract_strided_slice %4 {offsets = [1, 0], sizes = [95, 32], strides = [1, 1]} : vector<96x32xf32> to vector<95x32xf32>
    %6 = vector.extract_strided_slice %4 {offsets = [0, 0], sizes = [1, 32], strides = [1, 1]} : vector<96x32xf32> to vector<1x32xf32>
    %7 = tpu.concatenate %5, %6 in 0 : vector<95x32xf32>, vector<1x32xf32> -> vector<96x32xf32>
    %8 = arith.addf %2, %7 : vector<96x32xf32>
    %c0_6 = arith.constant 0 : index
    %c0_7 = arith.constant 0 : index
    %9 = vector.load %arg4[%c0_6, %c0_7] : memref<48x32xbf16, #tpu.memory_space<vmem>>, vector<48x32xbf16>
    %cst_8 = arith.constant dense<0.000000e+00> : vector<96x32xf32>
    %10 = tpu.matmul %0, %9, %cst_8 {dimension_numbers = #tpu.dot_dimension_numbers<[1], [0], [0], [1], [0, 0, 1, 1], [], []>} : vector<96x48xbf16>, vector<48x32xbf16>, vector<96x32xf32> -> vector<96x32xf32>
    %11 = vector.extract_strided_slice %10 {offsets = [2, 0], sizes = [94, 32], strides = [1, 1]} : vector<96x32xf32> to vector<94x32xf32>
    %12 = vector.extract_strided_slice %10 {offsets = [0, 0], sizes = [2, 32], strides = [1, 1]} : vector<96x32xf32> to vector<2x32xf32>
    %13 = tpu.concatenate %11, %12 in 0 : vector<94x32xf32>, vector<2x32xf32> -> vector<96x32xf32>
    %14 = arith.addf %8, %13 : vector<96x32xf32>
    %c0_9 = arith.constant 0 : index
    %c0_10 = arith.constant 0 : index
    %15 = vector.load %arg5[%c0_9, %c0_10] : memref<1x32xf32, #tpu.memory_space<vmem>>, vector<1x32xf32>
    %16 = vector.broadcast %15 : vector<1x32xf32> to vector<96x32xf32>
    %17 = arith.addf %14, %16 : vector<96x32xf32>
    %cst_11 = arith.constant 0.000000e+00 : f32
    %18 = vector.broadcast %cst_11 : f32 to vector<96x32xf32>
    %19 = arith.maximumf %17, %18 : vector<96x32xf32>
    %20 = arith.truncf %19 : vector<96x32xf32> to vector<96x32xbf16>
    %c0_12 = arith.constant 0 : index
    %c0_13 = arith.constant 0 : index
    %21 = vector.load %arg6[%c0_12, %c0_13] : memref<32x128xbf16, #tpu.memory_space<vmem>>, vector<32x128xbf16>
    %cst_14 = arith.constant dense<0.000000e+00> : vector<96x128xf32>
    %22 = tpu.matmul %20, %21, %cst_14 {dimension_numbers = #tpu.dot_dimension_numbers<[1], [0], [0], [1], [0, 0, 1, 1], [], []>} : vector<96x32xbf16>, vector<32x128xbf16>, vector<96x128xf32> -> vector<96x128xf32>
    %c0_15 = arith.constant 0 : index
    %c0_16 = arith.constant 0 : index
    %23 = vector.load %arg7[%c0_15, %c0_16] : memref<1x128xf32, #tpu.memory_space<vmem>>, vector<1x128xf32>
    %24 = vector.broadcast %23 : vector<1x128xf32> to vector<96x128xf32>
    %25 = arith.addf %22, %24 : vector<96x128xf32>
    %26 = tpu.iota {dimensions = array<i32: 1>} : vector<1x128xi32>
    %c54_i32 = arith.constant 54 : i32
    %27 = vector.broadcast %c54_i32 : i32 to vector<1x128xi32>
    %28 = arith.cmpi sge, %26, %27 : vector<1x128xi32>
    %c63_i32 = arith.constant 63 : i32
    %29 = vector.broadcast %c63_i32 : i32 to vector<1x128xi32>
    %30 = arith.cmpi slt, %26, %29 : vector<1x128xi32>
    %31 = arith.andi %28, %30 : vector<1x128xi1>
    %cst_17 = arith.constant -3.000000e+01 : f32
    %32 = vector.broadcast %cst_17 : f32 to vector<96x128xf32>
    %33 = arith.maximumf %25, %32 : vector<96x128xf32>
    %cst_18 = arith.constant 0.000000e+00 : f32
    %34 = vector.broadcast %cst_18 : f32 to vector<96x128xf32>
    %35 = arith.subf %34, %33 : vector<96x128xf32>
    %36 = math.exp %35 : vector<96x128xf32>
    %cst_19 = arith.constant 1.000000e+00 : f32
    %37 = vector.broadcast %cst_19 : f32 to vector<96x128xf32>
    %38 = arith.addf %37, %36 : vector<96x128xf32>
    %39 = tpu.reciprocal %38 {approx = true} : vector<96x128xf32> -> vector<96x128xf32>
    %40 = vector.shape_cast %31 : vector<1x128xi1> to vector<1x128xi1>
    %41 = vector.broadcast %40 : vector<1x128xi1> to vector<96x128xi1>
    %42 = arith.select %41, %39, %25 : vector<96x128xi1>, vector<96x128xf32>
    %c0_20 = arith.constant 0 : index
    %c0_21 = arith.constant 0 : index
    %43 = vector.load %arg8[%c0_20, %c0_21] : memref<96x128xf32, #tpu.memory_space<vmem>>, vector<96x128xf32>
    tpu.vector_store %arg8[%c0_20, %c0_21], %42 {strides = array<i32>} : memref<96x128xf32, #tpu.memory_space<vmem>>, vector<96x128xf32>,
    return
  }
  func.func @transform_0(%arg0: i32) -> (i32, i32) {
    %c0_i32 = arith.constant 0 : i32
    %c0_i32_0 = arith.constant 0 : i32
    return %arg0, %c0_i32 : i32, i32
  }
  func.func @transform_1(%arg0: i32) -> (i32, i32) {
    %c0_i32 = arith.constant 0 : i32
    %c0_i32_0 = arith.constant 0 : i32
    %c0_i32_1 = arith.constant 0 : i32
    return %c0_i32, %c0_i32_0 : i32, i32
  }
  func.func @transform_2(%arg0: i32) -> (i32, i32) {
    %c0_i32 = arith.constant 0 : i32
    %c0_i32_0 = arith.constant 0 : i32
    %c0_i32_1 = arith.constant 0 : i32
    return %c0_i32, %c0_i32_0 : i32, i32
  }
  func.func @transform_3(%arg0: i32) -> (i32, i32) {
    %c0_i32 = arith.constant 0 : i32
    %c0_i32_0 = arith.constant 0 : i32
    %c0_i32_1 = arith.constant 0 : i32
    return %c0_i32, %c0_i32_0 : i32, i32
  }
  func.func @transform_4(%arg0: i32) -> (i32, i32) {
    %c0_i32 = arith.constant 0 : i32
    %c0_i32_0 = arith.constant 0 : i32
    %c0_i32_1 = arith.constant 0 : i32
    return %c0_i32, %c0_i32_0 : i32, i32
  }
  func.func @transform_5(%arg0: i32) -> (i32, i32) {
    %c0_i32 = arith.constant 0 : i32
    %c0_i32_0 = arith.constant 0 : i32
    %c0_i32_1 = arith.constant 0 : i32
    return %c0_i32, %c0_i32_0 : i32, i32
  }
  func.func @transform_6(%arg0: i32) -> (i32, i32) {
    %c0_i32 = arith.constant 0 : i32
    %c0_i32_0 = arith.constant 0 : i32
    %c0_i32_1 = arith.constant 0 : i32
    return %c0_i32, %c0_i32_0 : i32, i32
  }
  func.func @transform_7(%arg0: i32) -> (i32, i32) {
    %c0_i32 = arith.constant 0 : i32
    %c0_i32_0 = arith.constant 0 : i32
    return %arg0, %c0_i32 : i32, i32
  }
}

</mosaic_0001>

<bundles_post_ra>
// kernel: tpu_custom_call.1
= control target key start
LH: loop header
LB: loop body
LE: loop exit
PB: predicated region body
PF: predicated region fallthrough
CT: control target
= control target key end

     0   :  { %v32_v0 = vlaneseq  ;;  %vm47_vm0 = vcmask 261120   ;;  %s170_s0 = inlined_call_operand.vmem [shape: f32[96,32], index: 0, kind: input, shape index: {}]   ;;  %s171_s1 = inlined_call_operand.vmem [shape: f32[96,32], index: 1, kind: output, shape index: {}]  }
   0x1   :  { %v8_v1 = vld [vmem:[%s170_s0] sm:$0xff]  ;;  %v19_v2 = vld [vmem:[%s170_s0 + $0x58] sm:$0xff]  ;;  %v9_v3 = vld [vmem:[%s170_s0 + $0x8] sm:$0xff] }
   0x2   :  { %v20_v4 = vrot.slane %v8_v1, 7  ;;  %v31_v5 = vrot.slane %v19_v2, 7  ;;  %v33_v6 = vshrl.u32 %v32_v0, 7  ;;  %v21_v7 = vrot.slane %v9_v3, 7  ;;  %v10_v8 = vld [vmem:[%s170_s0 + $0x10] sm:$0xff]  ;;  %v11_v9 = vld [vmem:[%s170_s0 + $0x18] sm:$0xff] }
   0x3   :  { %v22_v10 = vrot.slane %v10_v8, 7  ;;  %v23_v11 = vrot.slane %v11_v9, 7  ;;  %v12_v12 = vld [vmem:[%s170_s0 + $0x20] sm:$0xff]  ;;  %v13_v13 = vld [vmem:[%s170_s0 + $0x28] sm:$0xff]  ;;  %v14_v14 = vld [vmem:[%s170_s0 + $0x30] sm:$0xff] }
   0x4   :  { %vm34_vm1 = vcmp.lt.s32.totalorder %v33_v6, 1  ;;  %v24_v15 = vrot.slane %v12_v12, 7  ;;  %v25_v16 = vrot.slane %v13_v13, 7  ;;  %v26_v17 = vrot.slane %v14_v14, 7  ;;  %v15_v18 = vld [vmem:[%s170_s0 + $0x38] sm:$0xff]  ;;  %v16_v19 = vld [vmem:[%s170_s0 + $0x40] sm:$0xff] }
   0x5   :  { %v46_v20 = vsel %vm34_vm1, %v31_v5, %v20_v4  ;;  %v45_v21 = vsel %vm34_vm1, %v20_v4, %v21_v7  ;;  %v44_v22 = vsel %vm34_vm1, %v21_v7, %v22_v10  ;;  %v43_v23 = vsel %vm34_vm1, %v22_v10, %v23_v11  ;;  %v17_v24 = vld [vmem:[%s170_s0 + $0x48] sm:$0xff]  ;;  %v18_v25 = vld [vmem:[%s170_s0 + $0x50] sm:$0xff] }
   0x6   :  { %48 = vst.msk [vmem:[%s171_s1] sm:$0xff] %vm47_vm0, %v46_v20  ;;  %49 = vst.msk [vmem:[%s171_s1 + $0x8] sm:$0xff] %vm47_vm0, %v45_v21  ;;  %v42_v26 = vsel %vm34_vm1, %v23_v11, %v24_v15  ;;  %v41_v27 = vsel %vm34_vm1, %v24_v15, %v25_v16  ;;  %v40_v28 = vsel %vm34_vm1, %v25_v16, %v26_v17  ;;  %v27_v29 = vrot.slane %v15_v18, 7 }
   0x7   :  { %50 = vst.msk [vmem:[%s171_s1 + $0x10] sm:$0xff] %vm47_vm0, %v44_v22  ;;  %51 = vst.msk [vmem:[%s171_s1 + $0x18] sm:$0xff] %vm47_vm0, %v43_v23  ;;  %v28_v30 = vrot.slane %v16_v19, 7  ;;  %v29_v31 = vrot.slane %v17_v24, 7  ;;  %v30_v32 = vrot.slane %v18_v25, 7 }
   0x8   :  { %52 = vst.msk [vmem:[%s171_s1 + $0x20] sm:$0xff] %vm47_vm0, %v42_v26  ;;  %53 = vst.msk [vmem:[%s171_s1 + $0x28] sm:$0xff] %vm47_vm0, %v41_v27  ;;  %v39_v33 = vsel %vm34_vm1, %v26_v17, %v27_v29 }
   0x9   :  { %54 = vst.msk [vmem:[%s171_s1 + $0x30] sm:$0xff] %vm47_vm0, %v40_v28  ;;  %55 = vst.msk [vmem:[%s171_s1 + $0x38] sm:$0xff] %vm47_vm0, %v39_v33  ;;  %v38_v34 = vsel %vm34_vm1, %v27_v29, %v28_v30  ;;  %v37_v35 = vsel %vm34_vm1, %v28_v30, %v29_v31  ;;  %v36_v36 = vsel %vm34_vm1, %v29_v31, %v30_v32 }
   0xa   :  { %v35_v37 = vsel %vm34_vm1, %v30_v32, %v31_v5  ;;  %56 = vst.msk [vmem:[%s171_s1 + $0x40] sm:$0xff] %vm47_vm0, %v38_v34  ;;  %57 = vst.msk [vmem:[%s171_s1 + $0x48] sm:$0xff] %vm47_vm0, %v37_v35 }
   0xb   :  { %58 = vst.msk [vmem:[%s171_s1 + $0x50] sm:$0xff] %vm47_vm0, %v36_v36  ;;  %59 = vst.msk [vmem:[%s171_s1 + $0x58] sm:$0xff] %vm47_vm0, %v35_v37 }

// kernel: tpu_custom_call.1
= control target key start
LH: loop header
LB: loop body
LE: loop exit
PB: predicated region body
PF: predicated region fallthrough
CT: control target
= control target key end

     0   :  { %12 = vsyncpa [#allocation3], 0  ;;  %s1800_s0 = inlined_call_operand.vmem [shape: bf16[384,48], index: 0, kind: input, shape index: {}]   ;;  %s1801_s1 = inlined_call_operand.vmem [shape: bf16[48,32], index: 1, kind: input, shape index: {}]   ;;  %s1802_s2 = inlined_call_operand.vmem [shape: bf16[48,32], index: 2, kind: input, shape index: {}]   ;;  %s1803_s3 = inlined_call_operand.vmem [shape: bf16[48,32], index: 3, kind: input, shape index: {}]   ;;  %s1804_s4 = inlined_call_operand.vmem [shape: f32[1,32], index: 4, kind: input, shape index: {}]   ;;  %s1805_s5 = inlined_call_operand.vmem [shape: bf16[32,128], index: 5, kind: input, shape index: {}]   ;;  %s1806_s6 = inlined_call_operand.vmem [shape: f32[1,128], index: 6, kind: input, shape index: {}]   ;;  %s1807_s7 = inlined_call_operand.hbm [shape: f32[384,128], index: 7, kind: output, shape index: {}]  }
   0x1   :  { %14 = vsyncpa [#allocation3 + $0x1], 0  ;;  %s1479_s24 = smov 0   ;;  %s1481_s25 = smov 0  }
   0x2   :  { %s1483_s26 = smov 0   ;;  %s1485_s27 = smov 0  }
   0x3 LB: > { %s1500_s28 = sadd.s32 4294967295, %s1434_s27   ;;  %s1108_s29 = sadd.s32 4294967294, %s1434_s27   ;;  %s1434_s27 = sphi %s1485_s27, %s1815_s27   ;;  %s1430_s26 = sphi %s1483_s26, %s1814_s26   ;;  %s1426_s25 = sphi %s1481_s25, %s1813_s25   ;;  %s1422_s24 = sphi %s1479_s24, %s1812_s24  }
   0x4   : > { %s1504_s30 = sadd.s32 1, %s1434_s27   ;;  %s179_s8 = sadd.s32 1, %s1430_s26 }
   0x5   : > { %s176_s9 = ssub.s32 %s1434_s27, %s1504_s30  ;;  %p189_p0 = scmp.ne.s32.totalorder %s1430_s26, %s1426_s25 }
   0x6   : > { %p177_p1 = scmp.eq.s32.totalorder %s176_s9, 0  ;;  %p190_p2 = scmp.eq.s32.totalorder %s1500_s28, 3 }
   0x7   : > { %p195_p3 = scmp.ne.s32.totalorder %s1426_s25, %s1422_s24  ;;  %p196_p4 = scmp.eq.s32.totalorder %s1108_s29, 3 }
   0x8   : > { %s1515_s10 = scalar_select %p177_p1, %s1430_s26, %s179_s8  }
   0x9   : > { %p1517_p5 = por %p190_p2, %p189_p0  ;;  %p1521_p6 = por %p196_p4, %p195_p3 }
   0xa   : > { %p1111_p7 = scmp.ge.s32.totalorder %s1434_s27, 1  ;;  %p241_p8 = scmp.lt.s32.totalorder %s1434_s27, 5 }
   0xc   : > { %p242_p9 = pnand %p1111_p7, %p241_p8 }
   0xd   : > { %v1307_v0 = vld [vmem:[%s1802_s2] sm:$0xff] (!%p242_p9)   ;;  %s273_s15 = smul.u32 (!%p242_p9), 12, %s1500_s28  ;;  %v1309_v2 = vld [vmem:[%s1802_s2 + $0x8] sm:$0xff] (!%p242_p9)   ;;  %v1311_v4 = vld [vmem:[%s1802_s2 + $0x10] sm:$0xff] (!%p242_p9)   ;;  %vm353_vm0 = vcmask (!%p242_p9), 392192   ;;  %vm465_vm1 = vcmask (!%p242_p9), 1046528  }
   0xe   : > { %245 = sbr.rel (%p242_p9) target bundleno = 562 (0x232), region = 48  ;;  %v1308_v1 = vld [vmem:[%s1801_s1] sm:$0xff] (!%p242_p9)   ;;  %1195 = vmatprep.subr.bf16.mxu0 (!%p242_p9), %v1307_v0  ;;  %v1310_v3 = vld [vmem:[%s1801_s1 + $0x8] sm:$0xff] (!%p242_p9)   ;;  %v1313_v5 = vld [vmem:[%s1801_s1 + $0x10] sm:$0xff] (!%p242_p9)   ;;  %vm719_vm2 = vcmask (!%p242_p9), 1045504   ;;  %vm829_vm3 = vcmask (!%p242_p9), 261120  }
   0xf   : > { %p274_p10 = scmp.lt.s32.totalorder (!%p242_p9), %s273_s15, 47  ;;  %1196 = vmatpush3.bf16.msra.mxu0 (!%p242_p9), %v1307_v0  ;;  %1213 = vmatprep.subr.bf16.mxu1 (!%p242_p9), %v1308_v1  ;;  %v1315_v6 = vld [vmem:[%s1803_s3] sm:$0xff] (!%p242_p9)   ;;  %v1318_v9 = vld [vmem:[%s1803_s3 + $0x8] sm:$0xff] (!%p242_p9)   ;;  %v1321_v11 = vld [vmem:[%s1803_s3 + $0x10] sm:$0xff] (!%p242_p9)   ;;  %s270_s17 = sand.u32 (!%p242_p9), 1, %s1426_s25  }
  0x10   : > { %1197 = vmatprep.subr.bf16.mxu0 (!%p242_p9), %v1309_v2  ;;  %1214 = vmatpush3.bf16.msra.mxu1 (!%p242_p9), %v1308_v1  ;;  %v1322_v15 = vld [vmem:[%s1805_s5] sm:$0xff] (!%p242_p9)   ;;  %v1323_v16 = vld [vmem:[%s1805_s5 + $0x8] sm:$0xff] (!%p242_p9)   ;;  %s1265_s18 = smul.u32 (!%p242_p9), 96, %s270_s17  ;;  %s1436_s8 = smov (!%p242_p9), [#allocation2]  }
  0x11   : > { %1215 = vmatprep.subr.bf16.mxu1 (!%p242_p9), %v1310_v3  ;;  %s1159_s19 = smul.u32 (!%p242_p9), 1536, %s1500_s28  ;;  %s1759_s28 = scalar_lea.sflag (!%p242_p9), [#allocation3], %s270_s17 }
  0x13   : > { %1198 = vmatpush3.bf16.msra.mxu0 (!%p242_p9), %v1309_v2  ;;  %s1744_s23 = scalar_lea.hbm (!%p242_p9), %s1807_s7, %s1159_s19 }
  0x14   : > { %1199 = vmatprep.subr.bf16.mxu0 (!%p242_p9), %v1311_v4  ;;  %1216 = vmatpush3.bf16.msra.mxu1 (!%p242_p9), %v1310_v3 }
  0x15   : > { %s1817_s15 = smov (!%p274_p10, %s273_s15), 47  ;;  %1217 = vmatprep.subr.bf16.mxu1 %v1313_v5 }
  0x16   : > { %s1112_s9 = sshll.u32 %s1817_s15, 2  ;;  %s1701_s15 = scalar_lea.vmem [#allocation2], %s1265_s18 }
  0x17   : > { %s1549_s16 = scalar_lea.vmem %s1800_s0, %s1112_s9  ;;  %1200 = vmatpush3.bf16.msra.mxu0 %v1311_v4  ;;  %s1046_s20 = sshll.u32 %s1701_s15, 4  ;;  %s1746_s20 = int_to_ptr.vmem [resolvable:$true] %s1046_s20 }
  0x18   : > { %v1312_v7 = vld [vmem:[%s1549_s16] sm:$0xff]   ;;  %v1314_v8 = vld [vmem:[%s1549_s16 + $0x8] sm:$0xff]   ;;  %1218 = vmatpush3.bf16.msra.mxu1 %v1313_v5  ;;  %1231 = vmatprep.subr.bf16.mxu0 %v1315_v6  ;;  %v1316_v10 = vld [vmem:[%s1549_s16 + $0x10] sm:$0xff]   ;;  %s1372_s29 = scalar_lea.vmem %s1746_s20, 1536  ;;  %s1376_s9 = sshll.u32 %s1436_s8, 4  ;;  %s1377_s9 = int_to_ptr.vmem [resolvable:$false] %s1376_s9 }
  0x19   : > { %1201 = vmatprep.mubr.msk.bf16.mxu0 %vm353_vm0, %v1312_v7  ;;  %1219 = vmatprep.mubr.msk.bf16.mxu1 %vm353_vm0, %v1312_v7  ;;  %v1317_v12 = vld [vmem:[%s1549_s16 + $0x18] sm:$0xff]   ;;  %v1319_v13 = vld [vmem:[%s1549_s16 + $0x20] sm:$0xff]   ;;  %v1320_v14 = vld [vmem:[%s1549_s16 + $0x28] sm:$0xff]   ;;  %p1373_p11 = scmp.ne.s32.totalorder %s1746_s20, %s1372_s29  ;;  %s1378_s13 = scalar_lea.vmem %s1377_s9, 3072 }
  0x1a   : > { %1202 = vmatmul.mubr.msk.bf16.vlgmr.msra.gmra.mrb[0].mxu0 %vm353_vm0, %v1314_v8  ;;  %1249 = vmatprep.subr.bf16.mxu1 %v1322_v15  ;;  %p1379_p0 = scmp.lt.s32.totalorder %s1746_s20, %s1377_s9  ;;  %p1380_p1 = scmp.lt.s32.totalorder %s1378_s13, %s1372_s29 }
  0x1b   : > { %1232 = vmatpush3.bf16.msra.mxu0 %v1315_v6  ;;  %1220 = vmatmul.mubr.msk.bf16.vlgmr.msra.gmra.mrb[0].mxu1 %vm353_vm0, %v1314_v8  ;;  %p1374_p12 = pnand %p1373_p11, %p1517_p5 }
  0x1c   : > { %1205 = vmatprep.mubr.msk.bf16.mxu0 %vm353_vm0, %v1316_v10  ;;  %1233 = vmatprep.subr.bf16.mxu0 %v1318_v9  ;;  %p1381_p2 = por %p1380_p1, %p1379_p0 }
  0x1d   : > { %1223 = vmatprep.mubr.msk.bf16.mxu1 %vm353_vm0, %v1316_v10  ;;  %1250 = vmatpush3.bf16.msra.mxu1 %v1322_v15  ;;  %p1375_p13 = pneg %p1374_p12 }
  0x1e   : > { %1251 = vmatprep.subr.bf16.mxu1 %v1323_v16 }
  0x1f   : > { %1234 = vmatpush3.bf16.msra.mxu0 %v1318_v9  ;;  %p1382_p3 = pnand %p1381_p2, %p1375_p13 }
  0x20   : > { %1235 = vmatprep.subr.bf16.mxu0 %v1321_v11 }
  0x21   : > { %1252 = vmatpush3.bf16.msra.mxu1 %v1323_v16 }
  0x22   : > { %1206 = vmatmul.mubr.msk.bf16.gmra.mrb[4].mxu0 %vm353_vm0, %v1317_v12 }
  0x23   : > { %1224 = vmatmul.mubr.msk.bf16.gmra.mrb[4].mxu1 %vm353_vm0, %v1317_v12  ;;  %1209 = vmatprep.mubr.msk.bf16.mxu0 %vm353_vm0, %v1319_v13 }
  0x24   : > { %1236 = vmatpush3.bf16.msra.mxu0 %v1321_v11  ;;  %1227 = vmatprep.mubr.msk.bf16.mxu1 %vm353_vm0, %v1319_v13 }
  0x2a   : > { %1210 = vmatmul.mubr.msk.bf16.gmra.mrb[8].mxu0 %vm353_vm0, %v1320_v14 }
  0x2b   : > { %1228 = vmatmul.mubr.msk.bf16.gmra.mrb[8].mxu1 %vm353_vm0, %v1320_v14  ;;  %1237 = vmatprep.mubr.msk.bf16.mxu0 %vm353_vm0, %v1312_v7 }
  0x32   : > { %1238 = vmatmul.mubr.msk.bf16.vlgmr.msra.gmra.mrb[12].mxu0 %vm353_vm0, %v1314_v8 }
  0x33   : > { %1241 = vmatprep.mubr.msk.bf16.mxu0 %vm353_vm0, %v1316_v10 }
  0x3a   : > { %1242 = vmatmul.mubr.msk.bf16.gmra.mrb[16].mxu0 %vm353_vm0, %v1317_v12 }
  0x3b   : > { %1245 = vmatprep.mubr.msk.bf16.mxu0 %vm353_vm0, %v1319_v13 }
  0x42   : > { %1246 = vmatmul.mubr.msk.bf16.gmra.mrb[20].mxu0 %vm353_vm0, %v1320_v14 }
  0xed   : > { %v1203_v17 = vpop.f32.mrb[0].mxu0 }
  0xee   : > { %v406_v18 = vpop.f32.mrb[1].mxu0  ;;  %v1221_v19 = vpop.f32.mrb[0].mxu1  ;;  %v469_v22 = vrot.slane %v1203_v17, 1 }
  0xef   : > { %v1204_v20 = vpop.f32.mrb[2].mxu0  ;;  %v555_v21 = vpop.f32.mrb[1].mxu1  ;;  %v466_v26 = vrot.slane %v406_v18, 1 }
  0xf0   : > { %v471_v23 = vrot.slane %v1204_v20, 1  ;;  %v409_v24 = vpop.f32.mrb[3].mxu0  ;;  %v1222_v25 = vpop.f32.mrb[2].mxu1 }
  0xf1   : > { %v467_v27 = vrot.slane %v409_v24, 1  ;;  %v558_v28 = vpop.f32.mrb[3].mxu1 }
  0xf2   : > { %v472_v29 = vsel %vm465_vm1, %v469_v22, %v471_v23 }
  0xf3   : > { %v564_v30 = vadd.f32 %v1221_v19, %v472_v29  ;;  %v468_v31 = vsel %vm465_vm1, %v466_v26, %v467_v27  ;;  %v470_v32 = vsel %vm465_vm1, %v467_v27, %v469_v22 }
  0xf4   : > { %v556_v33 = vadd.f32 %v555_v21, %v468_v31  ;;  %v559_v34 = vadd.f32 %v558_v28, %v470_v32 }
  0xf5   : > { %v1207_v35 = vpop.f32.mrb[4].mxu0 }
  0xf6   : > { %v422_v36 = vpop.f32.mrb[5].mxu0  ;;  %v1225_v37 = vpop.f32.mrb[4].mxu1  ;;  %v477_v41 = vrot.slane %v1207_v35, 1 }
  0xf7   : > { %v473_v38 = vrot.slane %v422_v36, 1  ;;  %v1208_v39 = vpop.f32.mrb[6].mxu0  ;;  %v571_v40 = vpop.f32.mrb[5].mxu1 }
  0xf8   : > { %v479_v42 = vrot.slane %v1208_v39, 1  ;;  %v425_v43 = vpop.f32.mrb[7].mxu0  ;;  %v1226_v44 = vpop.f32.mrb[6].mxu1 }
  0xf9   : > { %v474_v45 = vsel %vm465_vm1, %v471_v23, %v473_v38  ;;  %v475_v46 = vrot.slane %v425_v43, 1  ;;  %v574_v47 = vpop.f32.mrb[7].mxu1  ;;  %v1616_v23 = vld [vmem:[%s1804_s4] ss:$0 sm:$0xff] }
  0xfa   : > { %v567_v48 = vadd.f32 %v1222_v25, %v474_v45  ;;  %v480_v49 = vsel %vm465_vm1, %v477_v41, %v479_v42 }
  0xfb   : > { %v580_v50 = vadd.f32 %v1225_v37, %v480_v49  ;;  %v476_v51 = vsel %vm465_vm1, %v473_v38, %v475_v46  ;;  %v478_v52 = vsel %vm465_vm1, %v475_v46, %v477_v41 }
  0xfc   : > { %v572_v53 = vadd.f32 %v571_v40, %v476_v51  ;;  %v575_v54 = vadd.f32 %v574_v47, %v478_v52 }
  0xfd   : > { %v1211_v55 = vpop.f32.mrb[8].mxu0 }
  0xfe   : > { %v438_v56 = vpop.f32.mrb[9].mxu0  ;;  %v1229_v57 = vpop.f32.mrb[8].mxu1  ;;  %v485_v61 = vrot.slane %v1211_v55, 1 }
  0xff   : > { %v481_v58 = vrot.slane %v438_v56, 1  ;;  %v1212_v59 = vpop.f32.mrb[10].mxu0  ;;  %v587_v60 = vpop.f32.mrb[9].mxu1 }
 0x100   : > { %v487_v62 = vrot.slane %v1212_v59, 1  ;;  %v441_v63 = vpop.f32.mrb[11].mxu0  ;;  %v1230_v0 = vpop.f32.mrb[10].mxu1 }
 0x101   : > { %v482_v1 = vsel %vm465_vm1, %v479_v42, %v481_v58  ;;  %v483_v2 = vrot.slane %v441_v63, 1  ;;  %v590_v3 = vpop.f32.mrb[11].mxu1 }
 0x102   : > { %v1598_v4 = vadd.f32 %v1226_v44, %v482_v1  ;;  %v488_v5 = vsel %vm465_vm1, %v485_v61, %v487_v62  ;;  %v502_v6 = vsel %vm465_vm1, %v487_v62, %v466_v26 }
 0x103   : > { %v1602_v7 = vadd.f32 %v1229_v57, %v488_v5  ;;  %v484_v8 = vsel %vm465_vm1, %v481_v58, %v483_v2  ;;  %v1605_v9 = vadd.f32 %v1230_v0, %v502_v6  ;;  %v486_v10 = vsel %vm465_vm1, %v483_v2, %v485_v61 }
 0x104   : > { %v1608_v11 = vadd.f32 %v587_v60, %v484_v8  ;;  %v1610_v12 = vadd.f32 %v590_v3, %v486_v10 }
 0x105   : > { %v1239_v13 = vpop.f32.mrb[12].mxu0 }
 0x106   : > { %v660_v14 = vpop.f32.mrb[13].mxu0  ;;  %v723_v16 = vrot.slane %v1239_v13, 2 }
 0x107   : > { %v1240_v15 = vpop.f32.mrb[14].mxu0  ;;  %v720_v19 = vrot.slane %v660_v14, 2 }
 0x108   : > { %v725_v17 = vrot.slane %v1240_v15, 2  ;;  %v663_v18 = vpop.f32.mrb[15].mxu0 }
 0x109   : > { %v721_v20 = vrot.slane %v663_v18, 2 }
 0x10a   : > { %v726_v21 = vsel %vm719_vm2, %v723_v16, %v725_v17 }
 0x10b   : > { %v759_v22 = vadd.f32 %v726_v21, %v564_v30  ;;  %v722_v24 = vsel %vm719_vm2, %v720_v19, %v721_v20  ;;  %v724_v25 = vsel %vm719_vm2, %v721_v20, %v723_v16 }
 0x10c   : > { %v757_v26 = vadd.f32 %v722_v24, %v556_v33  ;;  %v758_v27 = vadd.f32 %v724_v25, %v559_v34 }
 0x10d   : > { %v1243_v28 = vpop.f32.mrb[16].mxu0  ;;  %v778_v33 = vadd.f32 %v1616_v23, %v759_v22 }
 0x10e   : > { %v776_v29 = vadd.f32 %v1616_v23, %v757_v26  ;;  %v777_v31 = vadd.f32 %v1616_v23, %v758_v27  ;;  %v676_v32 = vpop.f32.mrb[17].mxu0  ;;  %v731_v38 = vrot.slane %v1243_v28, 2 }
 0x10f   : > { %v727_v35 = vrot.slane %v676_v32, 2  ;;  %v1244_v36 = vpop.f32.mrb[18].mxu0  ;;  %v790_v56 = vmax.f32 %v778_v33, 0.0 }
 0x110   : > { %v788_v30 = vmax.f32 %v776_v29, 0.0  ;;  %v789_v37 = vmax.f32 %v777_v31, 0.0  ;;  %v733_v39 = vrot.slane %v1244_v36, 2  ;;  %v679_v40 = vpop.f32.mrb[19].mxu0  ;;  %v1147_v29 = vld [vmem:[%s1806_s6] ss:$0 sm:$0xff] }
 0x111   : > { %v728_v41 = vsel %vm719_vm2, %v725_v17, %v727_v35  ;;  %v729_v42 = vrot.slane %v679_v40, 2 }
 0x112   : > { %v760_v34 = vadd.f32 %v728_v41, %v567_v48  ;;  %v734_v43 = vsel %vm719_vm2, %v731_v38, %v733_v39  ;;  %v800_v44 = vpack.c.bf16 %v789_v37, %v788_v30 }
 0x113   : > { %v763_v45 = vadd.f32 %v734_v43, %v580_v50  ;;  %v730_v46 = vsel %vm719_vm2, %v727_v35, %v729_v42  ;;  %v732_v47 = vsel %vm719_vm2, %v729_v42, %v731_v38 }
 0x114   : > { %v779_v49 = vadd.f32 %v1616_v23, %v760_v34  ;;  %v761_v51 = vadd.f32 %v730_v46, %v572_v53  ;;  %v762_v52 = vadd.f32 %v732_v47, %v575_v54  ;;  %1253 = vmatprep.mubr.msk.bf16.mxu1 %vm829_vm3, %v800_v44 }
 0x115   : > { %v1247_v55 = vpop.f32.mrb[20].mxu0  ;;  %v782_v53 = vadd.f32 %v1616_v23, %v763_v45 }
 0x116   : > { %v791_v57 = vmax.f32 %v779_v49, 0.0  ;;  %v780_v58 = vadd.f32 %v1616_v23, %v761_v51  ;;  %v781_v48 = vadd.f32 %v1616_v23, %v762_v52  ;;  %v692_v59 = vpop.f32.mrb[21].mxu0  ;;  %v739_v60 = vrot.slane %v1247_v55, 2 }
 0x117   : > { %v735_v50 = vrot.slane %v692_v59, 2  ;;  %v1248_v61 = vpop.f32.mrb[22].mxu0  ;;  %v794_v21 = vmax.f32 %v782_v53, 0.0 }
 0x118   : > { %v801_v62 = vpack.c.bf16 %v791_v57, %v790_v56  ;;  %v792_v63 = vmax.f32 %v780_v58, 0.0  ;;  %v793_v0 = vmax.f32 %v781_v48, 0.0  ;;  %v741_v1 = vrot.slane %v1248_v61, 2  ;;  %v695_v2 = vpop.f32.mrb[23].mxu0 }
 0x119   : > { %v736_v54 = vsel %vm719_vm2, %v733_v39, %v735_v50  ;;  %v737_v3 = vrot.slane %v695_v2, 2 }
 0x11a   : > { %v764_v5 = vadd.f32 %v736_v54, %v1598_v4  ;;  %v742_v6 = vsel %vm719_vm2, %v739_v60, %v741_v1  ;;  %v756_v8 = vsel %vm719_vm2, %v741_v1, %v720_v19  ;;  %1254 = vmatmul.mubr.msk.bf16.vlgmr.msra.gmra.mrb[12].mxu1 %vm829_vm3, %v801_v62  ;;  %v802_v10 = vpack.c.bf16 %v793_v0, %v792_v63 }
 0x11b   : > { %v767_v13 = vadd.f32 %v742_v6, %v1602_v7  ;;  %v768_v14 = vadd.f32 %v756_v8, %v1605_v9  ;;  %v738_v15 = vsel %vm719_vm2, %v735_v50, %v737_v3  ;;  %v740_v16 = vsel %vm719_vm2, %v737_v3, %v739_v60 }
 0x11c   : > { %v783_v17 = vadd.f32 %v1616_v23, %v764_v5  ;;  %v765_v18 = vadd.f32 %v738_v15, %v1608_v11  ;;  %v766_v4 = vadd.f32 %v740_v16, %v1610_v12  ;;  %1257 = vmatprep.mubr.msk.bf16.mxu1 %vm829_vm3, %v802_v10  ;;  %v929_v5 = vlaneseq }
 0x11d   : > { %v786_v19 = vadd.f32 %v1616_v23, %v767_v13  ;;  %v787_v20 = vadd.f32 %v1616_v23, %v768_v14 }
 0x11e   : > { %v795_v7 = vmax.f32 %v783_v17, 0.0  ;;  %v784_v9 = vadd.f32 %v1616_v23, %v765_v18  ;;  %v785_v22 = vadd.f32 %v1616_v23, %v766_v4 }
 0x11f   : > { %v798_v24 = vmax.f32 %v786_v19, 0.0  ;;  %v799_v25 = vmax.f32 %v787_v20, 0.0 }
 0x120   : > { %v796_v26 = vmax.f32 %v784_v9, 0.0  ;;  %v797_v27 = vmax.f32 %v785_v22, 0.0  ;;  %v803_v28 = vpack.c.bf16 %v795_v7, %v794_v21  ;;  %v930_v22 = vand.u32 127, %v929_v5 }
 0x121   : > { %v805_v11 = vpack.c.bf16 %v799_v25, %v798_v24 }
 0x122   : > { %1258 = vmatmul.mubr.msk.bf16.gmra.mrb[16].mxu1 %vm829_vm3, %v803_v28  ;;  %v804_v12 = vpack.c.bf16 %v797_v27, %v796_v26  ;;  %vm931_vm4 = vcmp.ge.s32.totalorder %v930_v22, 54  ;;  %vm932_vm5 = vcmp.lt.s32.totalorder %v930_v22, 63 }
 0x123   : > { %vm1694_vm6 = vmand %vm931_vm4, %vm932_vm5 }
 0x124   : > { %1261 = vmatprep.mubr.msk.bf16.mxu1 %vm829_vm3, %v804_v12 }
 0x12a   : > { %1262 = vmatmul.mubr.msk.bf16.gmra.mrb[20].mxu1 %vm829_vm3, %v805_v11 }
 0x1ed   : > { %v1255_v31 = vpop.f32.mrb[12].mxu1 }
 0x1ee   : > { %v1655_v32 = vadd.f32 %v1255_v31, %v1147_v29  ;;  %v882_v23 = vpop.f32.mrb[13].mxu1 }
 0x1ef   : > { %v1657_v35 = vadd.f32 %v1147_v29, %v882_v23  ;;  %v1256_v36 = vpop.f32.mrb[14].mxu1 }
 0x1f0   : > { %v936_v30 = vmax.f32 %v1655_v32, -30.0  ;;  %v1660_v37 = vadd.f32 %v1256_v36, %v1147_v29  ;;  %v885_v38 = vpop.f32.mrb[15].mxu1 }
 0x1f1   : > { %v934_v39 = vmax.f32 %v1657_v35, -30.0  ;;  %v1663_v40 = vadd.f32 %v1147_v29, %v885_v38 }
 0x1f2   : > { %v948_v41 = vsub.f32 0.0, %v936_v30  ;;  %v937_v42 = vmax.f32 %v1660_v37, -30.0 }
 0x1f3   : > { %v946_v33 = vsub.f32 0.0, %v934_v39  ;;  %v935_v34 = vmax.f32 %v1663_v40, -30.0 }
 0x1f4   : > { %v962_v43 = vmul.f32 1.442695, %v948_v41  ;;  %v949_v44 = vsub.f32 0.0, %v937_v42 }
 0x1f5   : > { %v958_v45 = vmul.f32 1.442695, %v946_v33  ;;  %v947_v46 = vsub.f32 0.0, %v935_v34  ;;  %v1259_v47 = vpop.f32.mrb[16].mxu1 }
 0x1f6   : > { %1324 = vpow2.f32 %v962_v43  ;;  %v964_v49 = vmul.f32 1.442695, %v949_v44  ;;  %v1667_v51 = vadd.f32 %v1259_v47, %v1147_v29  ;;  %v898_v52 = vpop.f32.mrb[17].mxu1 }
 0x1f7   : > { %1326 = vpow2.f32 %v958_v45  ;;  %v960_v55 = vmul.f32 1.442695, %v947_v46  ;;  %v1669_v56 = vadd.f32 %v1147_v29, %v898_v52  ;;  %v1260_v57 = vpop.f32.mrb[18].mxu1 }
 0x1f8   : > { %1328 = vpow2.f32 %v964_v49  ;;  %v940_v58 = vmax.f32 %v1667_v51, -30.0  ;;  %v1672_v48 = vadd.f32 %v1260_v57, %v1147_v29  ;;  %v901_v59 = vpop.f32.mrb[19].mxu1 }
 0x1f9   : > { %1330 = vpow2.f32 %v960_v55  ;;  %v938_v60 = vmax.f32 %v1669_v56, -30.0  ;;  %v1675_v50 = vadd.f32 %v1147_v29, %v901_v59 }
 0x1fa   : > { %v952_v61 = vsub.f32 0.0, %v940_v58  ;;  %v941_v62 = vmax.f32 %v1672_v48, -30.0 }
 0x1fb   : > { %v950_v63 = vsub.f32 0.0, %v938_v60  ;;  %v939_v0 = vmax.f32 %v1675_v50, -30.0 }
 0x1fc   : > { %v970_v1 = vmul.f32 1.442695, %v952_v61  ;;  %v953_v2 = vsub.f32 0.0, %v941_v62 }
 0x1fd   : > { %v966_v53 = vmul.f32 1.442695, %v950_v63  ;;  %v951_v54 = vsub.f32 0.0, %v939_v0  ;;  %v1263_v3 = vpop.f32.mrb[20].mxu1 }
 0x1fe   : > { %1332 = vpow2.f32 %v970_v1  ;;  %v972_v6 = vmul.f32 1.442695, %v953_v2  ;;  %v1679_v8 = vadd.f32 %v1263_v3, %v1147_v29  ;;  %v914_v10 = vpop.f32.mrb[21].mxu1 }
 0x1ff   : > { %1334 = vpow2.f32 %v966_v53  ;;  %v968_v13 = vmul.f32 1.442695, %v951_v54  ;;  %v1681_v14 = vadd.f32 %v1147_v29, %v914_v10  ;;  %v1264_v15 = vpop.f32.mrb[22].mxu1 }
 0x200   : > { %v1325_v16 = vpop.eup %1324  ;;  %1336 = vpow2.f32 %v972_v6  ;;  %v944_v17 = vmax.f32 %v1679_v8, -30.0  ;;  %v1684_v18 = vadd.f32 %v1264_v15, %v1147_v29  ;;  %v917_v4 = vpop.f32.mrb[23].mxu1 }
 0x201   : > { %v1327_v19 = vpop.eup %1326  ;;  %v984_v20 = vadd.f32 1.0, %v1325_v16  ;;  %1338 = vpow2.f32 %v968_v13  ;;  %v942_v21 = vmax.f32 %v1681_v14, -30.0  ;;  %v1687_v7 = vadd.f32 %v1147_v29, %v917_v4 }
 0x202   : > { %v1329_v9 = vpop.eup %1328  ;;  %v982_v24 = vadd.f32 1.0, %v1327_v19  ;;  %v956_v25 = vsub.f32 0.0, %v944_v17  ;;  %v945_v26 = vmax.f32 %v1684_v18, -30.0 }
 0x203   : > { %v1331_v27 = vpop.eup %1330  ;;  %1340 = vrcp.f32 %v984_v20  ;;  %v985_v28 = vadd.f32 1.0, %v1329_v9  ;;  %v954_v11 = vsub.f32 0.0, %v942_v21  ;;  %v943_v12 = vmax.f32 %v1687_v7, -30.0 }
 0x204   : > { %1342 = vrcp.f32 %v982_v24  ;;  %v983_v31 = vadd.f32 1.0, %v1331_v27  ;;  %v978_v23 = vmul.f32 1.442695, %v956_v25  ;;  %v957_v36 = vsub.f32 0.0, %v945_v26 }
 0x205   : > { %1344 = vrcp.f32 %v985_v28  ;;  %v974_v29 = vmul.f32 1.442695, %v954_v11  ;;  %v955_v30 = vsub.f32 0.0, %v943_v12 }
 0x206   : > { %1346 = vrcp.f32 %v983_v31  ;;  %v980_v38 = vmul.f32 1.442695, %v957_v36 }
 0x207   : > { %1348 = vpow2.f32 %v978_v23  ;;  %v976_v39 = vmul.f32 1.442695, %v955_v30 }
 0x208   : > { %v1333_v41 = vpop.eup %1332  ;;  %1350 = vpow2.f32 %v974_v29 }
 0x209   : > { %v1335_v42 = vpop.eup %1334  ;;  %v988_v33 = vadd.f32 1.0, %v1333_v41  ;;  %1352 = vpow2.f32 %v980_v38 }
 0x20a   : > { %v1337_v34 = vpop.eup %1336  ;;  %v986_v43 = vadd.f32 1.0, %v1335_v42  ;;  %1354 = vpow2.f32 %v976_v39 }
 0x20b   : > { %v1339_v44 = vpop.eup %1338  ;;  %1356 = vrcp.f32 %v988_v33  ;;  %v989_v46 = vadd.f32 1.0, %v1337_v34 }
 0x20c   : > { %1358 = vrcp.f32 %v986_v43  ;;  %v987_v47 = vadd.f32 1.0, %v1339_v44 }
 0x20d   : > { %v1341_v49 = vpop.eup %1340  ;;  %1360 = vrcp.f32 %v989_v46 }
 0x20e   : > { %v1343_v52 = vpop.eup %1342  ;;  %v1010_v55 = vsel %vm1694_vm6, %v1341_v49, %v1655_v32  ;;  %1362 = vrcp.f32 %v987_v47 }
 0x20f   : > { %v1345_v57 = vpop.eup %1344  ;;  %1022 = vst [vmem:[%s1701_s15 + $0x10] sm:$0xff] %v1010_v55  ;;  %v1008_v58 = vsel %vm1694_vm6, %v1343_v52, %v1657_v35 }
 0x210   : > { %v1347_v59 = vpop.eup %1346  ;;  %1020 = vst [vmem:[%s1701_s15] sm:$0xff] %v1008_v58  ;;  %v1011_v60 = vsel %vm1694_vm6, %v1345_v57, %v1660_v37 }
 0x211   : > { %v1349_v32 = vpop.eup %1348  ;;  %1023 = vst [vmem:[%s1701_s15 + $0x18] sm:$0xff] %v1011_v60  ;;  %v1009_v61 = vsel %vm1694_vm6, %v1347_v59, %v1663_v40 }
 0x212   : > { %v1351_v62 = vpop.eup %1350  ;;  %1021 = vst [vmem:[%s1701_s15 + $0x8] sm:$0xff] %v1009_v61  ;;  %v992_v63 = vadd.f32 1.0, %v1349_v32 }
 0x213   : > { %v1353_v0 = vpop.eup %1352  ;;  %v990_v1 = vadd.f32 1.0, %v1351_v62 }
 0x214   : > { %v1355_v35 = vpop.eup %1354  ;;  %1364 = vrcp.f32 %v992_v63  ;;  %v993_v2 = vadd.f32 1.0, %v1353_v0 }
 0x215   : > { %v1357_v53 = vpop.eup %1356  ;;  %1366 = vrcp.f32 %v990_v1  ;;  %v991_v37 = vadd.f32 1.0, %v1355_v35 }
 0x216   : > { %v1359_v54 = vpop.eup %1358  ;;  %v1014_v40 = vsel %vm1694_vm6, %v1357_v53, %v1667_v51  ;;  %1368 = vrcp.f32 %v993_v2 }
 0x217   : > { %v1361_v3 = vpop.eup %1360  ;;  %1026 = vst [vmem:[%s1701_s15 + $0x30] sm:$0xff] %v1014_v40  ;;  %v1012_v5 = vsel %vm1694_vm6, %v1359_v54, %v1669_v56  ;;  %1370 = vrcp.f32 %v991_v37 }
 0x218   : > { %v1363_v6 = vpop.eup %1362  ;;  %1024 = vst [vmem:[%s1701_s15 + $0x20] sm:$0xff] %v1012_v5  ;;  %v1015_v10 = vsel %vm1694_vm6, %v1361_v3, %v1672_v48 }
 0x219   : > { %1027 = vst [vmem:[%s1701_s15 + $0x38] sm:$0xff] %v1015_v10  ;;  %v1013_v51 = vsel %vm1694_vm6, %v1363_v6, %v1675_v50 }
 0x21a   : > { %1025 = vst [vmem:[%s1701_s15 + $0x28] sm:$0xff] %v1013_v51 }
 0x21e   : > { %v1365_v56 = vpop.eup %1364 }
 0x21f   : > { %v1367_v13 = vpop.eup %1366  ;;  %v1018_v15 = vsel %vm1694_vm6, %v1365_v56, %v1679_v8 }
 0x220   : > { %v1369_v16 = vpop.eup %1368  ;;  %1030 = vst [vmem:[%s1701_s15 + $0x50] sm:$0xff] %v1018_v15  ;;  %v1016_v48 = vsel %vm1694_vm6, %v1367_v13, %v1681_v14 }
 0x221   : > { %v1371_v50 = vpop.eup %1370  ;;  %1028 = vst [vmem:[%s1701_s15 + $0x40] sm:$0xff] %v1016_v48  ;;  %v1019_v8 = vsel %vm1694_vm6, %v1369_v16, %v1684_v18 }
 0x222   : > { %1031 = vst [vmem:[%s1701_s15 + $0x58] sm:$0xff] %v1019_v8  ;;  %v1017_v14 = vsel %vm1694_vm6, %v1371_v50, %v1687_v7 }
 0x223   : > { %1029 = vst [vmem:[%s1701_s15 + $0x48] sm:$0xff] %v1017_v14 }
 0x224   : > { %1385 = shalt.err (!%p1382_p3)
}
 0x225   : > { %s1386_s14 = scalar_lea.hbm %s1744_s23, 1536  ;;  %s1390_s18 = scalar_lea.hbm %s1807_s7, 6144 }
 0x226   : > { %p1387_p4 = scmp.ne.s32.totalorder %s1744_s23, %s1386_s14  ;;  %p1391_p9 = scmp.lt.u32.totalorder %s1744_s23, %s1807_s7 }
 0x227   : > { %p1392_p10 = scmp.lt.u32.totalorder %s1390_s18, %s1386_s14  ;;  %p1394_p12 = scmp.lt.u32.totalorder %s1386_s14, %s1744_s23 }
 0x228   : > { %p1388_p7 = pnand %p1387_p4, %p1517_p5 }
 0x229   : > { %p1393_p11 = por %p1392_p10, %p1391_p9 }
 0x22a   : > { %p1389_p8 = pneg %p1388_p7 }
 0x22b   : > { %p1395_p13 = por %p1394_p12, %p1393_p11 }
 0x22d   : > { %p1396_p0 = pnand %p1395_p13, %p1389_p8 }
 0x22f   : > { %1399 = shalt.err (!%p1396_p0)
}
 0x230   : > { %s1437_s21 = smov 128   ;;  %s1438_s22 = smov 8  }
 0x231   : > { %1266 = dma.vmem_to_hbm [thread:$0]  (%p1517_p5), %s1746_s20, 1536, %s1744_s23, %s1759_s28, %s1437_s21, %s1437_s21, %s1438_s22  }
 0x232 PF: > { %p1272_p1 = scmp.ge.s32.totalorder %s1434_s27, 2  ;;  %s1061_s29 = sand.u32 1, %s1422_s24  }
 0x233   : > { %s1062_s8 = scalar_lea.sflag [#allocation3], %s1061_s29 }
 0x234   : > { %p1269_p2 = pnand %p1272_p1, %p1521_p6 }
 0x236   : > { %1417 = dma.done.wait (!%p1269_p2), %s1062_s8, 1536  }
 0x237   : > { %1419 = vsyncadd (!%p1269_p2), %s1062_s8, 4294965760  ;;  %p17_p3 = scmp.ge.s32.totalorder %s1504_s30, 6   ;;  %s1812_s24 = smov %s1426_s25 }
 0x238   : > { %s1813_s25 = smov %s1430_s26  ;;  %s1814_s26 = smov %s1515_s10 }
 0x239   : > { %s1815_s27 = smov %s1504_s30  ;;  %19 = sbr.rel (!%p17_p3) target bundleno = 3 (0x3), region = 83 }
 0x240   :  { %1067 = vsyncpa [#allocation3], 1 }
 0x241   :  { %1069 = vsyncpa [#allocation3 + $0x1], 1 }

// kernel: tpu_custom_call.1
= control target key start
LH: loop header
LB: loop body
LE: loop exit
PB: predicated region body
PF: predicated region fallthrough
CT: control target
= control target key end

     0   :  { %12 = vsyncpa [#allocation3], 0  ;;  %s1800_s0 = inlined_call_operand.vmem [shape: bf16[384,48], index: 0, kind: input, shape index: {}]   ;;  %s1801_s1 = inlined_call_operand.vmem [shape: bf16[48,32], index: 1, kind: input, shape index: {}]   ;;  %s1802_s2 = inlined_call_operand.vmem [shape: bf16[48,32], index: 2, kind: input, shape index: {}]   ;;  %s1803_s3 = inlined_call_operand.vmem [shape: bf16[48,32], index: 3, kind: input, shape index: {}]   ;;  %s1804_s4 = inlined_call_operand.vmem [shape: f32[1,32], index: 4, kind: input, shape index: {}]   ;;  %s1805_s5 = inlined_call_operand.vmem [shape: bf16[32,128], index: 5, kind: input, shape index: {}]   ;;  %s1806_s6 = inlined_call_operand.vmem [shape: f32[1,128], index: 6, kind: input, shape index: {}]   ;;  %s1807_s7 = inlined_call_operand.hbm [shape: f32[384,128], index: 7, kind: output, shape index: {}]  }
   0x1   :  { %14 = vsyncpa [#allocation3 + $0x1], 0  ;;  %s1479_s24 = smov 0   ;;  %s1481_s25 = smov 0  }
   0x2   :  { %s1483_s26 = smov 0   ;;  %s1485_s27 = smov 0  }
   0x3 LB: > { %s1500_s28 = sadd.s32 4294967295, %s1434_s27   ;;  %s1108_s29 = sadd.s32 4294967294, %s1434_s27   ;;  %s1434_s27 = sphi %s1485_s27, %s1815_s27   ;;  %s1430_s26 = sphi %s1483_s26, %s1814_s26   ;;  %s1426_s25 = sphi %s1481_s25, %s1813_s25   ;;  %s1422_s24 = sphi %s1479_s24, %s1812_s24  }
   0x4   : > { %s1504_s30 = sadd.s32 1, %s1434_s27   ;;  %s179_s8 = sadd.s32 1, %s1430_s26 }
   0x5   : > { %s176_s9 = ssub.s32 %s1434_s27, %s1504_s30  ;;  %p189_p0 = scmp.ne.s32.totalorder %s1430_s26, %s1426_s25 }
   0x6   : > { %p177_p1 = scmp.eq.s32.totalorder %s176_s9, 0  ;;  %p190_p2 = scmp.eq.s32.totalorder %s1500_s28, 3 }
   0x7   : > { %p195_p3 = scmp.ne.s32.totalorder %s1426_s25, %s1422_s24  ;;  %p196_p4 = scmp.eq.s32.totalorder %s1108_s29, 3 }
   0x8   : > { %s1515_s10 = scalar_select %p177_p1, %s1430_s26, %s179_s8  }
   0x9   : > { %p1517_p5 = por %p190_p2, %p189_p0  ;;  %p1521_p6 = por %p196_p4, %p195_p3 }
   0xa   : > { %p1111_p7 = scmp.ge.s32.totalorder %s1434_s27, 1  ;;  %p241_p8 = scmp.lt.s32.totalorder %s1434_s27, 5 }
   0xc   : > { %p242_p9 = pnand %p1111_p7, %p241_p8 }
   0xd   : > { %v1307_v0 = vld [vmem:[%s1802_s2] sm:$0xff] (!%p242_p9)   ;;  %s273_s15 = smul.u32 (!%p242_p9), 12, %s1500_s28  ;;  %v1309_v2 = vld [vmem:[%s1802_s2 + $0x8] sm:$0xff] (!%p242_p9)   ;;  %v1311_v4 = vld [vmem:[%s1802_s2 + $0x10] sm:$0xff] (!%p242_p9)   ;;  %vm353_vm0 = vcmask (!%p242_p9), 392192   ;;  %vm465_vm1 = vcmask (!%p242_p9), 1046528  }
   0xe   : > { %245 = sbr.rel (%p242_p9) target bundleno = 562 (0x232), region = 48  ;;  %v1308_v1 = vld [vmem:[%s1801_s1] sm:$0xff] (!%p242_p9)   ;;  %1195 = vmatprep.subr.bf16.mxu0 (!%p242_p9), %v1307_v0  ;;  %v1310_v3 = vld [vmem:[%s1801_s1 + $0x8] sm:$0xff] (!%p242_p9)   ;;  %v1313_v5 = vld [vmem:[%s1801_s1 + $0x10] sm:$0xff] (!%p242_p9)   ;;  %vm719_vm2 = vcmask (!%p242_p9), 1045504   ;;  %vm829_vm3 = vcmask (!%p242_p9), 261120  }
   0xf   : > { %p274_p10 = scmp.lt.s32.totalorder (!%p242_p9), %s273_s15, 47  ;;  %1196 = vmatpush3.bf16.msra.mxu0 (!%p242_p9), %v1307_v0  ;;  %1213 = vmatprep.subr.bf16.mxu1 (!%p242_p9), %v1308_v1  ;;  %v1315_v6 = vld [vmem:[%s1803_s3] sm:$0xff] (!%p242_p9)   ;;  %v1318_v9 = vld [vmem:[%s1803_s3 + $0x8] sm:$0xff] (!%p242_p9)   ;;  %v1321_v11 = vld [vmem:[%s1803_s3 + $0x10] sm:$0xff] (!%p242_p9)   ;;  %s270_s17 = sand.u32 (!%p242_p9), 1, %s1426_s25  }
  0x10   : > { %1197 = vmatprep.subr.bf16.mxu0 (!%p242_p9), %v1309_v2  ;;  %1214 = vmatpush3.bf16.msra.mxu1 (!%p242_p9), %v1308_v1  ;;  %v1322_v15 = vld [vmem:[%s1805_s5] sm:$0xff] (!%p242_p9)   ;;  %v1323_v16 = vld [vmem:[%s1805_s5 + $0x8] sm:$0xff] (!%p242_p9)   ;;  %s1265_s18 = smul.u32 (!%p242_p9), 96, %s270_s17  ;;  %s1436_s8 = smov (!%p242_p9), [#allocation2]  }
  0x11   : > { %1215 = vmatprep.subr.bf16.mxu1 (!%p242_p9), %v1310_v3  ;;  %s1159_s19 = smul.u32 (!%p242_p9), 1536, %s1500_s28  ;;  %s1759_s28 = scalar_lea.sflag (!%p242_p9), [#allocation3], %s270_s17 }
  0x13   : > { %1198 = vmatpush3.bf16.msra.mxu0 (!%p242_p9), %v1309_v2  ;;  %s1744_s23 = scalar_lea.hbm (!%p242_p9), %s1807_s7, %s1159_s19 }
  0x14   : > { %1199 = vmatprep.subr.bf16.mxu0 (!%p242_p9), %v1311_v4  ;;  %1216 = vmatpush3.bf16.msra.mxu1 (!%p242_p9), %v1310_v3 }
  0x15   : > { %s1817_s15 = smov (!%p274_p10, %s273_s15), 47  ;;  %1217 = vmatprep.subr.bf16.mxu1 %v1313_v5 }
  0x16   : > { %s1112_s9 = sshll.u32 %s1817_s15, 2  ;;  %s1701_s15 = scalar_lea.vmem [#allocation2], %s1265_s18 }
  0x17   : > { %s1549_s16 = scalar_lea.vmem %s1800_s0, %s1112_s9  ;;  %1200 = vmatpush3.bf16.msra.mxu0 %v1311_v4  ;;  %s1046_s20 = sshll.u32 %s1701_s15, 4  ;;  %s1746_s20 = int_to_ptr.vmem [resolvable:$true] %s1046_s20 }
  0x18   : > { %v1312_v7 = vld [vmem:[%s1549_s16] sm:$0xff]   ;;  %v1314_v8 = vld [vmem:[%s1549_s16 + $0x8] sm:$0xff]   ;;  %1218 = vmatpush3.bf16.msra.mxu1 %v1313_v5  ;;  %1231 = vmatprep.subr.bf16.mxu0 %v1315_v6  ;;  %v1316_v10 = vld [vmem:[%s1549_s16 + $0x10] sm:$0xff]   ;;  %s1372_s29 = scalar_lea.vmem %s1746_s20, 1536  ;;  %s1376_s9 = sshll.u32 %s1436_s8, 4  ;;  %s1377_s9 = int_to_ptr.vmem [resolvable:$false] %s1376_s9 }
  0x19   : > { %1201 = vmatprep.mubr.msk.bf16.mxu0 %vm353_vm0, %v1312_v7  ;;  %1219 = vmatprep.mubr.msk.bf16.mxu1 %vm353_vm0, %v1312_v7  ;;  %v1317_v12 = vld [vmem:[%s1549_s16 + $0x18] sm:$0xff]   ;;  %v1319_v13 = vld [vmem:[%s1549_s16 + $0x20] sm:$0xff]   ;;  %v1320_v14 = vld [vmem:[%s1549_s16 + $0x28] sm:$0xff]   ;;  %p1373_p11 = scmp.ne.s32.totalorder %s1746_s20, %s1372_s29  ;;  %s1378_s13 = scalar_lea.vmem %s1377_s9, 3072 }
  0x1a   : > { %1202 = vmatmul.mubr.msk.bf16.vlgmr.msra.gmra.mrb[0].mxu0 %vm353_vm0, %v1314_v8  ;;  %1249 = vmatprep.subr.bf16.mxu1 %v1322_v15  ;;  %p1379_p0 = scmp.lt.s32.totalorder %s1746_s20, %s1377_s9  ;;  %p1380_p1 = scmp.lt.s32.totalorder %s1378_s13, %s1372_s29 }
  0x1b   : > { %1232 = vmatpush3.bf16.msra.mxu0 %v1315_v6  ;;  %1220 = vmatmul.mubr.msk.bf16.vlgmr.msra.gmra.mrb[0].mxu1 %vm353_vm0, %v1314_v8  ;;  %p1374_p12 = pnand %p1373_p11, %p1517_p5 }
  0x1c   : > { %1205 = vmatprep.mubr.msk.bf16.mxu0 %vm353_vm0, %v1316_v10  ;;  %1233 = vmatprep.subr.bf16.mxu0 %v1318_v9  ;;  %p1381_p2 = por %p1380_p1, %p1379_p0 }
  0x1d   : > { %1223 = vmatprep.mubr.msk.bf16.mxu1 %vm353_vm0, %v1316_v10  ;;  %1250 = vmatpush3.bf16.msra.mxu1 %v1322_v15  ;;  %p1375_p13 = pneg %p1374_p12 }
  0x1e   : > { %1251 = vmatprep.subr.bf16.mxu1 %v1323_v16 }
  0x1f   : > { %1234 = vmatpush3.bf16.msra.mxu0 %v1318_v9  ;;  %p1382_p3 = pnand %p1381_p2, %p1375_p13 }
  0x20   : > { %1235 = vmatprep.subr.bf16.mxu0 %v1321_v11 }
  0x21   : > { %1252 = vmatpush3.bf16.msra.mxu1 %v1323_v16 }
  0x22   : > { %1206 = vmatmul.mubr.msk.bf16.gmra.mrb[4].mxu0 %vm353_vm0, %v1317_v12 }
  0x23   : > { %1224 = vmatmul.mubr.msk.bf16.gmra.mrb[4].mxu1 %vm353_vm0, %v1317_v12  ;;  %1209 = vmatprep.mubr.msk.bf16.mxu0 %vm353_vm0, %v1319_v13 }
  0x24   : > { %1236 = vmatpush3.bf16.msra.mxu0 %v1321_v11  ;;  %1227 = vmatprep.mubr.msk.bf16.mxu1 %vm353_vm0, %v1319_v13 }
  0x2a   : > { %1210 = vmatmul.mubr.msk.bf16.gmra.mrb[8].mxu0 %vm353_vm0, %v1320_v14 }
  0x2b   : > { %1228 = vmatmul.mubr.msk.bf16.gmra.mrb[8].mxu1 %vm353_vm0, %v1320_v14  ;;  %1237 = vmatprep.mubr.msk.bf16.mxu0 %vm353_vm0, %v1312_v7 }
  0x32   : > { %1238 = vmatmul.mubr.msk.bf16.vlgmr.msra.gmra.mrb[12].mxu0 %vm353_vm0, %v1314_v8 }
  0x33   : > { %1241 = vmatprep.mubr.msk.bf16.mxu0 %vm353_vm0, %v1316_v10 }
  0x3a   : > { %1242 = vmatmul.mubr.msk.bf16.gmra.mrb[16].mxu0 %vm353_vm0, %v1317_v12 }
  0x3b   : > { %1245 = vmatprep.mubr.msk.bf16.mxu0 %vm353_vm0, %v1319_v13 }
  0x42   : > { %1246 = vmatmul.mubr.msk.bf16.gmra.mrb[20].mxu0 %vm353_vm0, %v1320_v14 }
  0xed   : > { %v1203_v17 = vpop.f32.mrb[0].mxu0 }
  0xee   : > { %v406_v18 = vpop.f32.mrb[1].mxu0  ;;  %v1221_v19 = vpop.f32.mrb[0].mxu1  ;;  %v469_v22 = vrot.slane %v1203_v17, 1 }
  0xef   : > { %v1204_v20 = vpop.f32.mrb[2].mxu0  ;;  %v555_v21 = vpop.f32.mrb[1].mxu1  ;;  %v466_v26 = vrot.slane %v406_v18, 1 }
  0xf0   : > { %v471_v23 = vrot.slane %v1204_v20, 1  ;;  %v409_v24 = vpop.f32.mrb[3].mxu0  ;;  %v1222_v25 = vpop.f32.mrb[2].mxu1 }
  0xf1   : > { %v467_v27 = vrot.slane %v409_v24, 1  ;;  %v558_v28 = vpop.f32.mrb[3].mxu1 }
  0xf2   : > { %v472_v29 = vsel %vm465_vm1, %v469_v22, %v471_v23 }
  0xf3   : > { %v564_v30 = vadd.f32 %v1221_v19, %v472_v29  ;;  %v468_v31 = vsel %vm465_vm1, %v466_v26, %v467_v27  ;;  %v470_v32 = vsel %vm465_vm1, %v467_v27, %v469_v22 }
  0xf4   : > { %v556_v33 = vadd.f32 %v555_v21, %v468_v31  ;;  %v559_v34 = vadd.f32 %v558_v28, %v470_v32 }
  0xf5   : > { %v1207_v35 = vpop.f32.mrb[4].mxu0 }
  0xf6   : > { %v422_v36 = vpop.f32.mrb[5].mxu0  ;;  %v1225_v37 = vpop.f32.mrb[4].mxu1  ;;  %v477_v41 = vrot.slane %v1207_v35, 1 }
  0xf7   : > { %v473_v38 = vrot.slane %v422_v36, 1  ;;  %v1208_v39 = vpop.f32.mrb[6].mxu0  ;;  %v571_v40 = vpop.f32.mrb[5].mxu1 }
  0xf8   : > { %v479_v42 = vrot.slane %v1208_v39, 1  ;;  %v425_v43 = vpop.f32.mrb[7].mxu0  ;;  %v1226_v44 = vpop.f32.mrb[6].mxu1 }
  0xf9   : > { %v474_v45 = vsel %vm465_vm1, %v471_v23, %v473_v38  ;;  %v475_v46 = vrot.slane %v425_v43, 1  ;;  %v574_v47 = vpop.f32.mrb[7].mxu1  ;;  %v1616_v23 = vld [vmem:[%s1804_s4] ss:$0 sm:$0xff] }
  0xfa   : > { %v567_v48 = vadd.f32 %v1222_v25, %v474_v45  ;;  %v480_v49 = vsel %vm465_vm1, %v477_v41, %v479_v42 }
  0xfb   : > { %v580_v50 = vadd.f32 %v1225_v37, %v480_v49  ;;  %v476_v51 = vsel %vm465_vm1, %v473_v38, %v475_v46  ;;  %v478_v52 = vsel %vm465_vm1, %v475_v46, %v477_v41 }
  0xfc   : > { %v572_v53 = vadd.f32 %v571_v40, %v476_v51  ;;  %v575_v54 = vadd.f32 %v574_v47, %v478_v52 }
  0xfd   : > { %v1211_v55 = vpop.f32.mrb[8].mxu0 }
  0xfe   : > { %v438_v56 = vpop.f32.mrb[9].mxu0  ;;  %v1229_v57 = vpop.f32.mrb[8].mxu1  ;;  %v485_v61 = vrot.slane %v1211_v55, 1 }
  0xff   : > { %v481_v58 = vrot.slane %v438_v56, 1  ;;  %v1212_v59 = vpop.f32.mrb[10].mxu0  ;;  %v587_v60 = vpop.f32.mrb[9].mxu1 }
 0x100   : > { %v487_v62 = vrot.slane %v1212_v59, 1  ;;  %v441_v63 = vpop.f32.mrb[11].mxu0  ;;  %v1230_v0 = vpop.f32.mrb[10].mxu1 }
 0x101   : > { %v482_v1 = vsel %vm465_vm1, %v479_v42, %v481_v58  ;;  %v483_v2 = vrot.slane %v441_v63, 1  ;;  %v590_v3 = vpop.f32.mrb[11].mxu1 }
 0x102   : > { %v1598_v4 = vadd.f32 %v1226_v44, %v482_v1  ;;  %v488_v5 = vsel %vm465_vm1, %v485_v61, %v487_v62  ;;  %v502_v6 = vsel %vm465_vm1, %v487_v62, %v466_v26 }
 0x103   : > { %v1602_v7 = vadd.f32 %v1229_v57, %v488_v5  ;;  %v484_v8 = vsel %vm465_vm1, %v481_v58, %v483_v2  ;;  %v1605_v9 = vadd.f32 %v1230_v0, %v502_v6  ;;  %v486_v10 = vsel %vm465_vm1, %v483_v2, %v485_v61 }
 0x104   : > { %v1608_v11 = vadd.f32 %v587_v60, %v484_v8  ;;  %v1610_v12 = vadd.f32 %v590_v3, %v486_v10 }
 0x105   : > { %v1239_v13 = vpop.f32.mrb[12].mxu0 }
 0x106   : > { %v660_v14 = vpop.f32.mrb[13].mxu0  ;;  %v723_v16 = vrot.slane %v1239_v13, 2 }
 0x107   : > { %v1240_v15 = vpop.f32.mrb[14].mxu0  ;;  %v720_v19 = vrot.slane %v660_v14, 2 }
 0x108   : > { %v725_v17 = vrot.slane %v1240_v15, 2  ;;  %v663_v18 = vpop.f32.mrb[15].mxu0 }
 0x109   : > { %v721_v20 = vrot.slane %v663_v18, 2 }
 0x10a   : > { %v726_v21 = vsel %vm719_vm2, %v723_v16, %v725_v17 }
 0x10b   : > { %v759_v22 = vadd.f32 %v726_v21, %v564_v30  ;;  %v722_v24 = vsel %vm719_vm2, %v720_v19, %v721_v20  ;;  %v724_v25 = vsel %vm719_vm2, %v721_v20, %v723_v16 }
 0x10c   : > { %v757_v26 = vadd.f32 %v722_v24, %v556_v33  ;;  %v758_v27 = vadd.f32 %v724_v25, %v559_v34 }
 0x10d   : > { %v1243_v28 = vpop.f32.mrb[16].mxu0  ;;  %v778_v33 = vadd.f32 %v1616_v23, %v759_v22 }
 0x10e   : > { %v776_v29 = vadd.f32 %v1616_v23, %v757_v26  ;;  %v777_v31 = vadd.f32 %v1616_v23, %v758_v27  ;;  %v676_v32 = vpop.f32.mrb[17].mxu0  ;;  %v731_v38 = vrot.slane %v1243_v28, 2 }
 0x10f   : > { %v727_v35 = vrot.slane %v676_v32, 2  ;;  %v1244_v36 = vpop.f32.mrb[18].mxu0  ;;  %v790_v56 = vmax.f32 %v778_v33, 0.0 }
 0x110   : > { %v788_v30 = vmax.f32 %v776_v29, 0.0  ;;  %v789_v37 = vmax.f32 %v777_v31, 0.0  ;;  %v733_v39 = vrot.slane %v1244_v36, 2  ;;  %v679_v40 = vpop.f32.mrb[19].mxu0  ;;  %v1147_v29 = vld [vmem:[%s1806_s6] ss:$0 sm:$0xff] }
 0x111   : > { %v728_v41 = vsel %vm719_vm2, %v725_v17, %v727_v35  ;;  %v729_v42 = vrot.slane %v679_v40, 2 }
 0x112   : > { %v760_v34 = vadd.f32 %v728_v41, %v567_v48  ;;  %v734_v43 = vsel %vm719_vm2, %v731_v38, %v733_v39  ;;  %v800_v44 = vpack.c.bf16 %v789_v37, %v788_v30 }
 0x113   : > { %v763_v45 = vadd.f32 %v734_v43, %v580_v50  ;;  %v730_v46 = vsel %vm719_vm2, %v727_v35, %v729_v42  ;;  %v732_v47 = vsel %vm719_vm2, %v729_v42, %v731_v38 }
 0x114   : > { %v779_v49 = vadd.f32 %v1616_v23, %v760_v34  ;;  %v761_v51 = vadd.f32 %v730_v46, %v572_v53  ;;  %v762_v52 = vadd.f32 %v732_v47, %v575_v54  ;;  %1253 = vmatprep.mubr.msk.bf16.mxu1 %vm829_vm3, %v800_v44 }
 0x115   : > { %v1247_v55 = vpop.f32.mrb[20].mxu0  ;;  %v782_v53 = vadd.f32 %v1616_v23, %v763_v45 }
 0x116   : > { %v791_v57 = vmax.f32 %v779_v49, 0.0  ;;  %v780_v58 = vadd.f32 %v1616_v23, %v761_v51  ;;  %v781_v48 = vadd.f32 %v1616_v23, %v762_v52  ;;  %v692_v59 = vpop.f32.mrb[21].mxu0  ;;  %v739_v60 = vrot.slane %v1247_v55, 2 }
 0x117   : > { %v735_v50 = vrot.slane %v692_v59, 2  ;;  %v1248_v61 = vpop.f32.mrb[22].mxu0  ;;  %v794_v21 = vmax.f32 %v782_v53, 0.0 }
 0x118   : > { %v801_v62 = vpack.c.bf16 %v791_v57, %v790_v56  ;;  %v792_v63 = vmax.f32 %v780_v58, 0.0  ;;  %v793_v0 = vmax.f32 %v781_v48, 0.0  ;;  %v741_v1 = vrot.slane %v1248_v61, 2  ;;  %v695_v2 = vpop.f32.mrb[23].mxu0 }
 0x119   : > { %v736_v54 = vsel %vm719_vm2, %v733_v39, %v735_v50  ;;  %v737_v3 = vrot.slane %v695_v2, 2 }
 0x11a   : > { %v764_v5 = vadd.f32 %v736_v54, %v1598_v4  ;;  %v742_v6 = vsel %vm719_vm2, %v739_v60, %v741_v1  ;;  %v756_v8 = vsel %vm719_vm2, %v741_v1, %v720_v19  ;;  %1254 = vmatmul.mubr.msk.bf16.vlgmr.msra.gmra.mrb[12].mxu1 %vm829_vm3, %v801_v62  ;;  %v802_v10 = vpack.c.bf16 %v793_v0, %v792_v63 }
 0x11b   : > { %v767_v13 = vadd.f32 %v742_v6, %v1602_v7  ;;  %v768_v14 = vadd.f32 %v756_v8, %v1605_v9  ;;  %v738_v15 = vsel %vm719_vm2, %v735_v50, %v737_v3  ;;  %v740_v16 = vsel %vm719_vm2, %v737_v3, %v739_v60 }
 0x11c   : > { %v783_v17 = vadd.f32 %v1616_v23, %v764_v5  ;;  %v765_v18 = vadd.f32 %v738_v15, %v1608_v11  ;;  %v766_v4 = vadd.f32 %v740_v16, %v1610_v12  ;;  %1257 = vmatprep.mubr.msk.bf16.mxu1 %vm829_vm3, %v802_v10  ;;  %v929_v5 = vlaneseq }
 0x11d   : > { %v786_v19 = vadd.f32 %v1616_v23, %v767_v13  ;;  %v787_v20 = vadd.f32 %v1616_v23, %v768_v14 }
 0x11e   : > { %v795_v7 = vmax.f32 %v783_v17, 0.0  ;;  %v784_v9 = vadd.f32 %v1616_v23, %v765_v18  ;;  %v785_v22 = vadd.f32 %v1616_v23, %v766_v4 }
 0x11f   : > { %v798_v24 = vmax.f32 %v786_v19, 0.0  ;;  %v799_v25 = vmax.f32 %v787_v20, 0.0 }
 0x120   : > { %v796_v26 = vmax.f32 %v784_v9, 0.0  ;;  %v797_v27 = vmax.f32 %v785_v22, 0.0  ;;  %v803_v28 = vpack.c.bf16 %v795_v7, %v794_v21  ;;  %v930_v22 = vand.u32 127, %v929_v5 }
 0x121   : > { %v805_v11 = vpack.c.bf16 %v799_v25, %v798_v24 }
 0x122   : > { %1258 = vmatmul.mubr.msk.bf16.gmra.mrb[16].mxu1 %vm829_vm3, %v803_v28  ;;  %v804_v12 = vpack.c.bf16 %v797_v27, %v796_v26  ;;  %vm931_vm4 = vcmp.ge.s32.totalorder %v930_v22, 54  ;;  %vm932_vm5 = vcmp.lt.s32.totalorder %v930_v22, 63 }
 0x123   : > { %vm1694_vm6 = vmand %vm931_vm4, %vm932_vm5 }
 0x124   : > { %1261 = vmatprep.mubr.msk.bf16.mxu1 %vm829_vm3, %v804_v12 }
 0x12a   : > { %1262 = vmatmul.mubr.msk.bf16.gmra.mrb[20].mxu1 %vm829_vm3, %v805_v11 }
 0x1ed   : > { %v1255_v31 = vpop.f32.mrb[12].mxu1 }
 0x1ee   : > { %v1655_v32 = vadd.f32 %v1255_v31, %v1147_v29  ;;  %v882_v23 = vpop.f32.mrb[13].mxu1 }
 0x1ef   : > { %v1657_v35 = vadd.f32 %v1147_v29, %v882_v23  ;;  %v1256_v36 = vpop.f32.mrb[14].mxu1 }
 0x1f0   : > { %v936_v30 = vmax.f32 %v1655_v32, -30.0  ;;  %v1660_v37 = vadd.f32 %v1256_v36, %v1147_v29  ;;  %v885_v38 = vpop.f32.mrb[15].mxu1 }
 0x1f1   : > { %v934_v39 = vmax.f32 %v1657_v35, -30.0  ;;  %v1663_v40 = vadd.f32 %v1147_v29, %v885_v38 }
 0x1f2   : > { %v948_v41 = vsub.f32 0.0, %v936_v30  ;;  %v937_v42 = vmax.f32 %v1660_v37, -30.0 }
 0x1f3   : > { %v946_v33 = vsub.f32 0.0, %v934_v39  ;;  %v935_v34 = vmax.f32 %v1663_v40, -30.0 }
 0x1f4   : > { %v962_v43 = vmul.f32 1.442695, %v948_v41  ;;  %v949_v44 = vsub.f32 0.0, %v937_v42 }
 0x1f5   : > { %v958_v45 = vmul.f32 1.442695, %v946_v33  ;;  %v947_v46 = vsub.f32 0.0, %v935_v34  ;;  %v1259_v47 = vpop.f32.mrb[16].mxu1 }
 0x1f6   : > { %1324 = vpow2.f32 %v962_v43  ;;  %v964_v49 = vmul.f32 1.442695, %v949_v44  ;;  %v1667_v51 = vadd.f32 %v1259_v47, %v1147_v29  ;;  %v898_v52 = vpop.f32.mrb[17].mxu1 }
 0x1f7   : > { %1326 = vpow2.f32 %v958_v45  ;;  %v960_v55 = vmul.f32 1.442695, %v947_v46  ;;  %v1669_v56 = vadd.f32 %v1147_v29, %v898_v52  ;;  %v1260_v57 = vpop.f32.mrb[18].mxu1 }
 0x1f8   : > { %1328 = vpow2.f32 %v964_v49  ;;  %v940_v58 = vmax.f32 %v1667_v51, -30.0  ;;  %v1672_v48 = vadd.f32 %v1260_v57, %v1147_v29  ;;  %v901_v59 = vpop.f32.mrb[19].mxu1 }
 0x1f9   : > { %1330 = vpow2.f32 %v960_v55  ;;  %v938_v60 = vmax.f32 %v1669_v56, -30.0  ;;  %v1675_v50 = vadd.f32 %v1147_v29, %v901_v59 }
 0x1fa   : > { %v952_v61 = vsub.f32 0.0, %v940_v58  ;;  %v941_v62 = vmax.f32 %v1672_v48, -30.0 }
 0x1fb   : > { %v950_v63 = vsub.f32 0.0, %v938_v60  ;;  %v939_v0 = vmax.f32 %v1675_v50, -30.0 }
 0x1fc   : > { %v970_v1 = vmul.f32 1.442695, %v952_v61  ;;  %v953_v2 = vsub.f32 0.0, %v941_v62 }
 0x1fd   : > { %v966_v53 = vmul.f32 1.442695, %v950_v63  ;;  %v951_v54 = vsub.f32 0.0, %v939_v0  ;;  %v1263_v3 = vpop.f32.mrb[20].mxu1 }
 0x1fe   : > { %1332 = vpow2.f32 %v970_v1  ;;  %v972_v6 = vmul.f32 1.442695, %v953_v2  ;;  %v1679_v8 = vadd.f32 %v1263_v3, %v1147_v29  ;;  %v914_v10 = vpop.f32.mrb[21].mxu1 }
 0x1ff   : > { %1334 = vpow2.f32 %v966_v53  ;;  %v968_v13 = vmul.f32 1.442695, %v951_v54  ;;  %v1681_v14 = vadd.f32 %v1147_v29, %v914_v10  ;;  %v1264_v15 = vpop.f32.mrb[22].mxu1 }
 0x200   : > { %v1325_v16 = vpop.eup %1324  ;;  %1336 = vpow2.f32 %v972_v6  ;;  %v944_v17 = vmax.f32 %v1679_v8, -30.0  ;;  %v1684_v18 = vadd.f32 %v1264_v15, %v1147_v29  ;;  %v917_v4 = vpop.f32.mrb[23].mxu1 }
 0x201   : > { %v1327_v19 = vpop.eup %1326  ;;  %v984_v20 = vadd.f32 1.0, %v1325_v16  ;;  %1338 = vpow2.f32 %v968_v13  ;;  %v942_v21 = vmax.f32 %v1681_v14, -30.0  ;;  %v1687_v7 = vadd.f32 %v1147_v29, %v917_v4 }
 0x202   : > { %v1329_v9 = vpop.eup %1328  ;;  %v982_v24 = vadd.f32 1.0, %v1327_v19  ;;  %v956_v25 = vsub.f32 0.0, %v944_v17  ;;  %v945_v26 = vmax.f32 %v1684_v18, -30.0 }
 0x203   : > { %v1331_v27 = vpop.eup %1330  ;;  %1340 = vrcp.f32 %v984_v20  ;;  %v985_v28 = vadd.f32 1.0, %v1329_v9  ;;  %v954_v11 = vsub.f32 0.0, %v942_v21  ;;  %v943_v12 = vmax.f32 %v1687_v7, -30.0 }
 0x204   : > { %1342 = vrcp.f32 %v982_v24  ;;  %v983_v31 = vadd.f32 1.0, %v1331_v27  ;;  %v978_v23 = vmul.f32 1.442695, %v956_v25  ;;  %v957_v36 = vsub.f32 0.0, %v945_v26 }
 0x205   : > { %1344 = vrcp.f32 %v985_v28  ;;  %v974_v29 = vmul.f32 1.442695, %v954_v11  ;;  %v955_v30 = vsub.f32 0.0, %v943_v12 }
 0x206   : > { %1346 = vrcp.f32 %v983_v31  ;;  %v980_v38 = vmul.f32 1.442695, %v957_v36 }
 0x207   : > { %1348 = vpow2.f32 %v978_v23  ;;  %v976_v39 = vmul.f32 1.442695, %v955_v30 }
 0x208   : > { %v1333_v41 = vpop.eup %1332  ;;  %1350 = vpow2.f32 %v974_v29 }
 0x209   : > { %v1335_v42 = vpop.eup %1334  ;;  %v988_v33 = vadd.f32 1.0, %v1333_v41  ;;  %1352 = vpow2.f32 %v980_v38 }
 0x20a   : > { %v1337_v34 = vpop.eup %1336  ;;  %v986_v43 = vadd.f32 1.0, %v1335_v42  ;;  %1354 = vpow2.f32 %v976_v39 }
 0x20b   : > { %v1339_v44 = vpop.eup %1338  ;;  %1356 = vrcp.f32 %v988_v33  ;;  %v989_v46 = vadd.f32 1.0, %v1337_v34 }
 0x20c   : > { %1358 = vrcp.f32 %v986_v43  ;;  %v987_v47 = vadd.f32 1.0, %v1339_v44 }
 0x20d   : > { %v1341_v49 = vpop.eup %1340  ;;  %1360 = vrcp.f32 %v989_v46 }
 0x20e   : > { %v1343_v52 = vpop.eup %1342  ;;  %v1010_v55 = vsel %vm1694_vm6, %v1341_v49, %v1655_v32  ;;  %1362 = vrcp.f32 %v987_v47 }
 0x20f   : > { %v1345_v57 = vpop.eup %1344  ;;  %1022 = vst [vmem:[%s1701_s15 + $0x10] sm:$0xff] %v1010_v55  ;;  %v1008_v58 = vsel %vm1694_vm6, %v1343_v52, %v1657_v35 }
 0x210   : > { %v1347_v59 = vpop.eup %1346  ;;  %1020 = vst [vmem:[%s1701_s15] sm:$0xff] %v1008_v58  ;;  %v1011_v60 = vsel %vm1694_vm6, %v1345_v57, %v1660_v37 }
 0x211   : > { %v1349_v32 = vpop.eup %1348  ;;  %1023 = vst [vmem:[%s1701_s15 + $0x18] sm:$0xff] %v1011_v60  ;;  %v1009_v61 = vsel %vm1694_vm6, %v1347_v59, %v1663_v40 }
 0x212   : > { %v1351_v62 = vpop.eup %1350  ;;  %1021 = vst [vmem:[%s1701_s15 + $0x8] sm:$0xff] %v1009_v61  ;;  %v992_v63 = vadd.f32 1.0, %v1349_v32 }
 0x213   : > { %v1353_v0 = vpop.eup %1352  ;;  %v990_v1 = vadd.f32 1.0, %v1351_v62 }
 0x214   : > { %v1355_v35 = vpop.eup %1354  ;;  %1364 = vrcp.f32 %v992_v63  ;;  %v993_v2 = vadd.f32 1.0, %v1353_v0 }
 0x215   : > { %v1357_v53 = vpop.eup %1356  ;;  %1366 = vrcp.f32 %v990_v1  ;;  %v991_v37 = vadd.f32 1.0, %v1355_v35 }
 0x216   : > { %v1359_v54 = vpop.eup %1358  ;;  %v1014_v40 = vsel %vm1694_vm6, %v1357_v53, %v1667_v51  ;;  %1368 = vrcp.f32 %v993_v2 }
 0x217   : > { %v1361_v3 = vpop.eup %1360  ;;  %1026 = vst [vmem:[%s1701_s15 + $0x30] sm:$0xff] %v1014_v40  ;;  %v1012_v5 = vsel %vm1694_vm6, %v1359_v54, %v1669_v56  ;;  %1370 = vrcp.f32 %v991_v37 }
 0x218   : > { %v1363_v6 = vpop.eup %1362  ;;  %1024 = vst [vmem:[%s1701_s15 + $0x20] sm:$0xff] %v1012_v5  ;;  %v1015_v10 = vsel %vm1694_vm6, %v1361_v3, %v1672_v48 }
 0x219   : > { %1027 = vst [vmem:[%s1701_s15 + $0x38] sm:$0xff] %v1015_v10  ;;  %v1013_v51 = vsel %vm1694_vm6, %v1363_v6, %v1675_v50 }
 0x21a   : > { %1025 = vst [vmem:[%s1701_s15 + $0x28] sm:$0xff] %v1013_v51 }
 0x21e   : > { %v1365_v56 = vpop.eup %1364 }
 0x21f   : > { %v1367_v13 = vpop.eup %1366  ;;  %v1018_v15 = vsel %vm1694_vm6, %v1365_v56, %v1679_v8 }
 0x220   : > { %v1369_v16 = vpop.eup %1368  ;;  %1030 = vst [vmem:[%s1701_s15 + $0x50] sm:$0xff] %v1018_v15  ;;  %v1016_v48 = vsel %vm1694_vm6, %v1367_v13, %v1681_v14 }
 0x221   : > { %v1371_v50 = vpop.eup %1370  ;;  %1028 = vst [vmem:[%s1701_s15 + $0x40] sm:$0xff] %v1016_v48  ;;  %v1019_v8 = vsel %vm1694_vm6, %v1369_v16, %v1684_v18 }
 0x222   : > { %1031 = vst [vmem:[%s1701_s15 + $0x58] sm:$0xff] %v1019_v8  ;;  %v1017_v14 = vsel %vm1694_vm6, %v1371_v50, %v1687_v7 }
 0x223   : > { %1029 = vst [vmem:[%s1701_s15 + $0x48] sm:$0xff] %v1017_v14 }
 0x224   : > { %1385 = shalt.err (!%p1382_p3)
}
 0x225   : > { %s1386_s14 = scalar_lea.hbm %s1744_s23, 1536  ;;  %s1390_s18 = scalar_lea.hbm %s1807_s7, 6144 }
 0x226   : > { %p1387_p4 = scmp.ne.s32.totalorder %s1744_s23, %s1386_s14  ;;  %p1391_p9 = scmp.lt.u32.totalorder %s1744_s23, %s1807_s7 }
 0x227   : > { %p1392_p10 = scmp.lt.u32.totalorder %s1390_s18, %s1386_s14  ;;  %p1394_p12 = scmp.lt.u32.totalorder %s1386_s14, %s1744_s23 }
 0x228   : > { %p1388_p7 = pnand %p1387_p4, %p1517_p5 }
 0x229   : > { %p1393_p11 = por %p1392_p10, %p1391_p9 }
 0x22a   : > { %p1389_p8 = pneg %p1388_p7 }
 0x22b   : > { %p1395_p13 = por %p1394_p12, %p1393_p11 }
 0x22d   : > { %p1396_p0 = pnand %p1395_p13, %p1389_p8 }
 0x22f   : > { %1399 = shalt.err (!%p1396_p0)
}
 0x230   : > { %s1437_s21 = smov 128   ;;  %s1438_s22 = smov 8  }
 0x231   : > { %1266 = dma.vmem_to_hbm [thread:$0]  (%p1517_p5), %s1746_s20, 1536, %s1744_s23, %s1759_s28, %s1437_s21, %s1437_s21, %s1438_s22  }
 0x232 PF: > { %p1272_p1 = scmp.ge.s32.totalorder %s1434_s27, 2  ;;  %s1061_s29 = sand.u32 1, %s1422_s24  }
 0x233   : > { %s1062_s8 = scalar_lea.sflag [#allocation3], %s1061_s29 }
 0x234   : > { %p1269_p2 = pnand %p1272_p1, %p1521_p6 }
 0x236   : > { %1417 = dma.done.wait (!%p1269_p2), %s1062_s8, 1536  }
 0x237   : > { %1419 = vsyncadd (!%p1269_p2), %s1062_s8, 4294965760  ;;  %p17_p3 = scmp.ge.s32.totalorder %s1504_s30, 6   ;;  %s1812_s24 = smov %s1426_s25 }
 0x238   : > { %s1813_s25 = smov %s1430_s26  ;;  %s1814_s26 = smov %s1515_s10 }
 0x239   : > { %s1815_s27 = smov %s1504_s30  ;;  %19 = sbr.rel (!%p17_p3) target bundleno = 3 (0x3), region = 83 }
 0x240   :  { %1067 = vsyncpa [#allocation3], 1 }
 0x241   :  { %1069 = vsyncpa [#allocation3 + $0x1], 1 }

</bundles_post_ra>
